<compile_context>
chip_gen: v6e
topology: v6e:2x2x1
jax: 0.10.0
libtpu: 0.0.40
codegen_flags: <defaults>
</compile_context>

<pallas_src>
import functools
import math

import jax
import jax.numpy as jnp
from jax import lax
from jax.experimental import pallas as pl
from jax.experimental.pallas import tpu as pltpu


# ----------------------------------------------------------------------------
# In-kernel helpers: pool / broadcast the 4 sub-pixel "phase" row groups of a
# [R, 1] per-row vector (R = phases * C, phase-major row ordering).
# ----------------------------------------------------------------------------
def _pool_phases(v, phases):
    if phases == 1:
        return v
    c = v.shape[0] // phases
    out = v[0:c]
    for ph in range(1, phases):
        out = out + v[ph * c:(ph + 1) * c]
    return out


def _tile_phases(v, phases):
    if phases == 1:
        return v
    return jnp.concatenate([v] * phases, axis=0)


# ----------------------------------------------------------------------------
# Fused GEMM kernel (single M block per BN, or BN-free gridded):
#   out[R, tm] = bf16(W[R,K]) @ bf16(patchesT[K,tm])   (f32 accumulate)
#                [+ bias]  [+ single-pass train-mode BN]  [+ ReLU]  [+ residual]
# ----------------------------------------------------------------------------
def _conv_gemm_kernel(w_ref, p_ref, *rest, relu, bn, residual, has_bias,
                      phases, eps):
    idx = 0
    if has_bias:
        b_ref = rest[idx]; idx += 1
    if bn:
        g_ref, bb_ref = rest[idx], rest[idx + 1]; idx += 2
    if residual:
        r_ref = rest[idx]; idx += 1
    o_ref = rest[idx]

    acc = jnp.dot(w_ref[...], p_ref[...], preferred_element_type=jnp.float32)
    if has_bias:
        acc = acc + b_ref[...]                       # [R,1] broadcast over lanes

    if bn:
        # Train-mode BatchNorm over every pixel (and over the 4 sub-pixel
        # phases of a channel for the conv-transpose path).
        rows, cols = acc.shape
        count = float(phases * cols)                 # = N*Ho*Wo per channel
        row_sum = jnp.sum(acc, axis=1, keepdims=True)          # [R,1]
        mean = _pool_phases(row_sum, phases) / count            # [C,1]
        xc = acc - _tile_phases(mean, phases)
        row_ss = jnp.sum(xc * xc, axis=1, keepdims=True)        # [R,1]
        var = _pool_phases(row_ss, phases) / count               # [C,1]
        scale = _tile_phases(g_ref[...] * lax.rsqrt(var + eps), phases)
        shift = _tile_phases(bb_ref[...], phases)
        acc = xc * scale + shift

    if relu:
        acc = jnp.maximum(acc, 0.0)
    if residual:                                     # skip-add after BN+ReLU
        acc = acc + r_ref[...]
    o_ref[...] = acc.astype(o_ref.dtype)


# ----------------------------------------------------------------------------
# Two-pass gridded BN kernel, grid = (2, grid_m):
#   pass 0: GEMM each M tile, accumulate per-row sum / sum-sq in VMEM scratch
#   pass 1: GEMM again (K is tiny, recompute is cheaper than keeping the
#           whole output resident), apply BN / ReLU / residual, store.
# The M axis shares the stats scratch, so it must stay sequential.
# ----------------------------------------------------------------------------
def _conv_gemm_bn2pass_kernel(w_ref, p_ref, g_ref, bb_ref, *rest,
                              relu, residual, phases, eps, count):
    idx = 0
    if residual:
        r_ref = rest[idx]; idx += 1
    o_ref = rest[idx]
    sum_sc = rest[idx + 1]
    ssq_sc = rest[idx + 2]

    p = pl.program_id(0)       # 0: stats pass, 1: apply pass
    i = pl.program_id(1)

    acc = jnp.dot(w_ref[...], p_ref[...], preferred_element_type=jnp.float32)

    @pl.when(jnp.logical_and(p == 0, i == 0))
    def _():
        sum_sc[...] = jnp.zeros_like(sum_sc)
        ssq_sc[...] = jnp.zeros_like(ssq_sc)

    @pl.when(p == 0)
    def _():
        sum_sc[...] = sum_sc[...] + jnp.sum(acc, axis=1, keepdims=True)
        ssq_sc[...] = ssq_sc[...] + jnp.sum(acc * acc, axis=1, keepdims=True)
        o_ref[...] = acc.astype(o_ref.dtype)   # placeholder; rewritten in pass 1

    @pl.when(p == 1)
    def _():
        ch_sum = _pool_phases(sum_sc[...], phases)               # [C,1]
        ch_ssq = _pool_phases(ssq_sc[...], phases)
        mean = ch_sum / count
        var = ch_ssq / count - mean * mean
        scale = g_ref[...] * lax.rsqrt(var + eps)                # [C,1]
        shift = bb_ref[...] - mean * scale
        scale_f = _tile_phases(scale, phases)                    # [R,1]
        shift_f = _tile_phases(shift, phases)
        out = acc * scale_f + shift_f
        if relu:
            out = jnp.maximum(out, 0.0)
        if residual:
            out = out + r_ref[...]
        o_ref[...] = out.astype(o_ref.dtype)


def _pick_tm(m, tm_max=2048):
    """Lane tile for the M axis: 256-multiple dividing M, <= tm_max, aiming
    for >=2 tiles (v6e/v7x MXU width & megacore); single block for small M."""
    if m % 256 != 0 or m <= 512:
        return m
    tm = (min(tm_max, m // 2) // 256) * 256
    while tm > 0 and m % tm != 0:
        tm -= 256
    return tm if tm > 0 else m


def conv_gemm(wmat, patchesT, bias=None, *, relu=False, bn=None, residualT=None,
              phases=1, eps=1e-5, out_dtype=jnp.bfloat16, tm=None, tm_max=2048):
    R, K = wmat.shape
    K2, M = patchesT.shape
    assert K2 == K
    if tm is None:
        tm = _pick_tm(M, tm_max)
    assert M % tm == 0
    grid_m = M // tm
    fuse_bn = bn is not None
    has_res = residualT is not None
    has_bias = (bias is not None) and not fuse_bn   # BN mean-sub cancels bias
    two_pass = fuse_bn and grid_m > 1

    out_bytes = jnp.dtype(out_dtype).itemsize
    # VMEM budget guard (double-buffered tiles), with headroom so the explicit
    # 32 MiB scoped limit is safe on v5e (16 MiB default) and v7x (64 MiB/TC).
    vmem_limit = 32 * 1024 * 1024
    est = (R * K * 2                       # resident bf16 weights
           + 2 * K * tm * 2                # 2x bf16 patch tiles
           + 2 * R * tm * out_bytes        # 2x output tiles
           + (2 * R * tm * 2 if has_res else 0)
           + 8 * R * 4)                    # bias / bn vectors / scratch
    assert est <= vmem_limit - (8 << 20), (
        f"GEMM tile too large for VMEM budget: {est}B (R={R}, K={K}, tm={tm})")

    wm = wmat.astype(jnp.bfloat16)
    pt = patchesT.astype(jnp.bfloat16)

    patch_kwargs = {}
    if grid_m >= 8:
        # Small-K GEMMs finish their MXU burst quickly; deeper patch buffering
        # hides the exposed DMA and costs almost no VMEM at these K.
        patch_kwargs["pipeline_mode"] = pl.Buffered(3)

    flops = int((2 if two_pass else 1) * 2 * R * K * M)
    bytes_accessed = int(R * K * 2 + (2 if two_pass else 1) * K * M * 2
                         + R * M * out_bytes
                         + (R * M * 2 if has_res else 0) + 16 * R)
    cost = pl.CostEstimate(flops=flops, transcendentals=int(R if fuse_bn else 0),
                           bytes_accessed=bytes_accessed)

    if not two_pass:
        in_specs = [pl.BlockSpec((R, K), lambda i: (0, 0)),
                    pl.BlockSpec((K, tm), lambda i: (0, i), **patch_kwargs)]
        args = [wm, pt]
        if has_bias:
            in_specs.append(pl.BlockSpec((R, 1), lambda i: (0, 0)))
            args.append(bias.reshape(R, 1).astype(jnp.float32))
        if fuse_bn:
            gamma, beta = bn
            C = R // phases
            in_specs += [pl.BlockSpec((C, 1), lambda i: (0, 0)),
                         pl.BlockSpec((C, 1), lambda i: (0, 0))]
            args += [gamma.reshape(C, 1).astype(jnp.float32),
                     beta.reshape(C, 1).astype(jnp.float32)]
        if has_res:
            in_specs.append(pl.BlockSpec((R, tm), lambda i: (0, i)))
            args.append(residualT.astype(jnp.bfloat16))
        kernel = functools.partial(_conv_gemm_kernel, relu=relu, bn=fuse_bn,
                                   residual=has_res, has_bias=has_bias,
                                   phases=phases, eps=eps)
        return pl.pallas_call(
            kernel,
            out_shape=jax.ShapeDtypeStruct((R, M), out_dtype),
            grid=(grid_m,),
            in_specs=in_specs,
            out_specs=pl.BlockSpec((R, tm), lambda i: (0, i)),
            compiler_params=pltpu.CompilerParams(
                dimension_semantics=("parallel",),     # megacore-shard M
                vmem_limit_bytes=vmem_limit),
            cost_estimate=cost,
        )(*args)

    # ---- two-pass gridded BN ------------------------------------------------
    gamma, beta = bn
    C = R // phases
    in_specs = [pl.BlockSpec((R, K), lambda p, i: (0, 0)),
                pl.BlockSpec((K, tm), lambda p, i: (0, i), **patch_kwargs),
                pl.BlockSpec((C, 1), lambda p, i: (0, 0)),
                pl.BlockSpec((C, 1), lambda p, i: (0, 0))]
    args = [wm, pt,
            gamma.reshape(C, 1).astype(jnp.float32),
            beta.reshape(C, 1).astype(jnp.float32)]
    if has_res:
        in_specs.append(pl.BlockSpec((R, tm), lambda p, i: (0, i)))
        args.append(residualT.astype(jnp.bfloat16))
    kernel = functools.partial(_conv_gemm_bn2pass_kernel, relu=relu,
                               residual=has_res, phases=phases, eps=eps,
                               count=float(phases * M))
    return pl.pallas_call(
        kernel,
        out_shape=jax.ShapeDtypeStruct((R, M), out_dtype),
        grid=(2, grid_m),
        in_specs=in_specs,
        out_specs=pl.BlockSpec((R, tm), lambda p, i: (0, i)),
        scratch_shapes=[pltpu.VMEM((R, 1), jnp.float32),
                        pltpu.VMEM((R, 1), jnp.float32)],
        compiler_params=pltpu.CompilerParams(
            # M tiles share the BN-stats scratch -> must stay sequential;
            # megacore sharding would need per-core partials + a combine.
            dimension_semantics=("arbitrary", "arbitrary"),
            vmem_limit_bytes=vmem_limit),
        cost_estimate=cost,
    )(*args)


# ----------------------------------------------------------------------------
# im2col in TRANSPOSED layout: patchesT[K = kh*kw*Cin, M = N*Ho*Wo]
# (column ordering (n, oy, ox); row ordering (tap_i, tap_j, cin)).  Runs in
# bf16 so the 9x replication only costs half the HBM traffic.
# ----------------------------------------------------------------------------
def _im2col_T(x_nhwc, kh, kw, stride, padding):
    N, H, W, Cin = x_nhwc.shape
    xp = jnp.pad(x_nhwc, ((0, 0), (padding, padding), (padding, padding), (0, 0)))
    Ho = (H + 2 * padding - kh) // stride + 1
    Wo = (W + 2 * padding - kw) // stride + 1
    taps = []
    for i in range(kh):
        for j in range(kw):
            t = xp[:, i:i + stride * Ho:stride, j:j + stride * Wo:stride, :]
            taps.append(jnp.moveaxis(t, 3, 0).reshape(Cin, N * Ho * Wo))
    return jnp.concatenate(taps, axis=0), Ho, Wo


def conv2d_t(x_nhwc, wmat, bias, *, kh, kw, stride, padding, relu=False,
             bn=None, out_dtype=jnp.bfloat16, tm=None, tm_max=2048, eps=1e-5):
    """Conv2d via transposed GEMM with prepacked bf16 weights; optional fused
    train-mode BN + ReLU."""
    N, H, W, Cin = x_nhwc.shape
    R, K = wmat.shape
    assert K == kh * kw * Cin
    x = x_nhwc.astype(jnp.bfloat16)            # bf16 BEFORE im2col
    patchesT, Ho, Wo = _im2col_T(x, kh, kw, stride, padding)
    outT = conv_gemm(wmat, patchesT, bias, relu=relu, bn=bn, phases=1, eps=eps,
                     out_dtype=out_dtype, tm=tm, tm_max=tm_max)   # [R, M]
    return outT.reshape(R, N, Ho, Wo).transpose(1, 2, 3, 0)       # NHWC


def conv_transpose2d_s2(x_nhwc, wmat4, bias4, *, relu=False, bn=None,
                        residual_nhwc=None, out_dtype=jnp.bfloat16, tm=None,
                        tm_max=2048, eps=1e-5):
    """ConvTranspose2d(k=4, stride=2, pad=1) via sub-pixel decomposition: one
    3x3 conv with 4*Cout prepacked phase channels + depth-to-space interleave.
    Optionally fuses train-mode BN + ReLU + residual skip into the GEMM."""
    N, H, W, Cin = x_nhwc.shape
    R4, K = wmat4.shape
    assert K == 9 * Cin
    Cout = R4 // 4
    x = x_nhwc.astype(jnp.bfloat16)
    patchesT, Ho, Wo = _im2col_T(x, 3, 3, stride=1, padding=1)    # Ho=H, Wo=W

    resT = None
    if residual_nhwc is not None:
        # TODO(synk): fold this phase re-layout + the depth-to-space below into
        # the kernel via strided stores; kept XLA-side (in bf16) for now.
        resT = (residual_nhwc.astype(jnp.bfloat16)
                .reshape(N, H, 2, W, 2, Cout)
                .transpose(2, 4, 5, 0, 1, 3).reshape(4 * Cout, N * H * W))

    outT = conv_gemm(wmat4, patchesT, bias4, relu=relu, bn=bn, residualT=resT,
                     phases=4, eps=eps, out_dtype=out_dtype, tm=tm,
                     tm_max=tm_max)                               # [4*Cout, M]
    out = (outT.reshape(2, 2, Cout, N, H, W)
           .transpose(3, 4, 0, 5, 1, 2).reshape(N, 2 * H, 2 * W, Cout))
    return out


# ----------------------------------------------------------------------------
# Weight prepacking (hoisted out of the jitted forward).
# ----------------------------------------------------------------------------
def _pack_conv_w(w_oihw):
    Cout, Cin, kh, kw = w_oihw.shape
    return (jnp.transpose(w_oihw, (0, 2, 3, 1))
            .reshape(Cout, kh * kw * Cin).astype(jnp.bfloat16))


# phase/window-row -> original 4-tap kernel index; unlisted entries are zero.
_CONVT_IDX = {(0, 0): 3, (0, 1): 1, (1, 1): 2, (1, 2): 0}


def _pack_convT_w(w_iohw, bias):
    """PyTorch ConvTranspose2d(k=4,s=2,p=1) weight (Cin,Cout,4,4) -> the
    equivalent 3x3 conv with 4*Cout phase rows, as a (4*Cout, 9*Cin) GEMM."""
    Cin, Cout, kh, kw = w_iohw.shape
    assert kh == 4 and kw == 4
    wc = jnp.zeros((2, 2, Cout, 3, 3, Cin), jnp.float32)
    for ph in range(2):
        for r in range(3):
            if (ph, r) not in _CONVT_IDX:
                continue
            for pw in range(2):
                for s in range(3):
                    if (pw, s) not in _CONVT_IDX:
                        continue
                    wc = wc.at[ph, pw, :, r, s, :].set(
                        w_iohw[:, :, _CONVT_IDX[(ph, r)], _CONVT_IDX[(pw, s)]].T)
    return (wc.reshape(4 * Cout, 9 * Cin).astype(jnp.bfloat16),
            jnp.tile(bias, 4))


# ----------------------------------------------------------------------------
# Deterministic parameter init (mirrors weights_init: xavier_normal for convs,
# BN gamma ~ N(1, 0.02), BN beta = 0), then prepack for the GEMM kernels.
# ----------------------------------------------------------------------------
def _xavier_conv(key, cout, cin, kh, kw):
    std = math.sqrt(2.0 / (cin * kh * kw + cout * kh * kw))
    return jax.random.normal(key, (cout, cin, kh, kw), jnp.float32) * std


def _xavier_convT(key, cin, cout, kh, kw):
    std = math.sqrt(2.0 / (cin * kh * kw + cout * kh * kw))
    return jax.random.normal(key, (cin, cout, kh, kw), jnp.float32) * std


def init_params(key, in_channels=1, out_channels=1, base=16):
    ks = jax.random.split(key, 8)
    p = {}
    # frozen "first" module stand-in: Conv2d(in_channels -> 1, 3x3, pad=1)
    p["first_w"] = _xavier_conv(ks[0], 1, in_channels, 3, 3)
    p["first_b"] = jnp.zeros((1,), jnp.float32)
    # AEv2_0(2, out_channels) stand-in
    p["enc1_w"] = _xavier_conv(ks[1], base, 2, 3, 3)
    p["bn1_g"] = 1.0 + 0.02 * jax.random.normal(ks[2], (base,), jnp.float32)
    p["bn1_b"] = jnp.zeros((base,), jnp.float32)
    p["enc2_w"] = _xavier_conv(ks[3], 2 * base, base, 3, 3)
    p["bn2_g"] = 1.0 + 0.02 * jax.random.normal(ks[4], (2 * base,), jnp.float32)
    p["bn2_b"] = jnp.zeros((2 * base,), jnp.float32)
    p["dec1_w"] = _xavier_convT(ks[5], 2 * base, base, 4, 4)
    p["bn3_g"] = 1.0 + 0.02 * jax.random.normal(ks[6], (base,), jnp.float32)
    p["bn3_b"] = jnp.zeros((base,), jnp.float32)
    p["dec2_w"] = _xavier_convT(ks[7], base, out_channels, 4, 4)
    p["dec2_b"] = jnp.zeros((out_channels,), jnp.float32)
    return p


def prepare_params(p):
    """One-time packing of GEMM-ready bf16 weights (outside the jitted fwd)."""
    q = {}
    q["first_wmat"] = _pack_conv_w(p["first_w"])
    q["first_b"] = p["first_b"]
    q["enc1_wmat"] = _pack_conv_w(p["enc1_w"]);  q["bn1"] = (p["bn1_g"], p["bn1_b"])
    q["enc2_wmat"] = _pack_conv_w(p["enc2_w"]);  q["bn2"] = (p["bn2_g"], p["bn2_b"])
    q["dec1_wmat"], _ = _pack_convT_w(p["dec1_w"], jnp.zeros((p["dec1_w"].shape[1],), jnp.float32))
    q["bn3"] = (p["bn3_g"], p["bn3_b"])
    q["dec2_wmat"], q["dec2_b4"] = _pack_convT_w(p["dec2_w"], p["dec2_b"])
    return q


# ----------------------------------------------------------------------------
# AEv4_0 forward:  inp = x;  x = first(x);  x = main(cat([inp, x], dim=1))
# Total: 5 fused pallas_calls (first, enc1, enc2, dec1, dec2).
# ----------------------------------------------------------------------------
def aev4_forward(params, x_nchw):
    x = jnp.transpose(x_nchw, (0, 2, 3, 1)).astype(jnp.bfloat16)  # NCHW->NHWC
    inp = x

    # self.first(x)  (frozen pretrained module stand-in), one full-M block.
    f = conv2d_t(x, params["first_wmat"], params["first_b"], kh=3, kw=3,
                 stride=1, padding=1)

    # torch.cat([inp, x], dim=1)  (channel dim == last axis in NHWC)
    h = jnp.concatenate([inp, f], axis=-1)

    # self.main == AEv2_0(2, out_channels) stand-in; each stage is one
    # pallas_call with conv + BN + ReLU (+ residual) fused; no bias under BN.
    e1 = conv2d_t(h, params["enc1_wmat"], None, kh=3, kw=3, stride=2, padding=1,
                  bn=params["bn1"], relu=True)
    e2 = conv2d_t(e1, params["enc2_wmat"], None, kh=3, kw=3, stride=2, padding=1,
                  bn=params["bn2"], relu=True)
    d1 = conv_transpose2d_s2(e2, params["dec1_wmat"], None,
                             bn=params["bn3"], relu=True, residual_nhwc=e1)
    d2 = conv_transpose2d_s2(d1, params["dec2_wmat"], params["dec2_b4"],
                             out_dtype=jnp.float32)

    return jnp.transpose(d2, (0, 3, 1, 2))  # NHWC -> NCHW


if __name__ == "__main__":
    key = jax.random.PRNGKey(0)
    kx, kp, kt = jax.random.split(key, 3)

    # --- main forward at the module's shapes --------------------------------
    # in_channels=1 so that cat([inp, first(x)]) has the 2 channels AEv2_0 expects.
    x = jax.random.normal(kx, (2, 1, 16, 16), jnp.float32)
    raw = init_params(kp, in_channels=1, out_channels=1)
    params = prepare_params(raw)

    fwd = jax.jit(aev4_forward)
    out = fwd(params, x)
    jax.block_until_ready(out)
    assert out.shape == (2, 1, 16, 16), out.shape
    assert out.dtype == jnp.float32
    assert bool(jnp.all(jnp.isfinite(out)))

    # --- check 1: ConvTranspose2d(k=4,s=2,p=1) sub-pixel GEMM vs XLA ref ----
    k1, k2, k3 = jax.random.split(kt, 3)
    cin_t, cout_t = 8, 4
    xt = jax.random.normal(k1, (2, 6, 6, cin_t), jnp.float32)
    wt = jax.random.normal(k2, (cin_t, cout_t, 4, 4), jnp.float32) * 0.1
    bt = jax.random.normal(k3, (cout_t,), jnp.float32) * 0.1
    wmat_t, b4_t = _pack_convT_w(wt, bt)
    got = conv_transpose2d_s2(xt, wmat_t, b4_t, out_dtype=jnp.float32)
    xr = xt.astype(jnp.bfloat16).astype(jnp.float32)
    wr = wt.astype(jnp.bfloat16).astype(jnp.float32)
    ref = lax.conv_general_dilated(
        xr, jnp.transpose(wr[:, :, ::-1, ::-1], (2, 3, 0, 1)),
        window_strides=(1, 1), padding=((2, 2), (2, 2)), lhs_dilation=(2, 2),
        dimension_numbers=("NHWC", "HWIO", "NHWC")) + bt[None, None, None, :]
    assert got.shape == ref.shape
    assert bool(jnp.allclose(got, ref, atol=1e-2, rtol=1e-2)), \
        float(jnp.max(jnp.abs(got - ref)))

    # --- check 2: two-pass gridded BN == single-block fused BN --------------
    k4, k5, k6, k7 = jax.random.split(jax.random.PRNGKey(7), 4)
    xb = jax.random.normal(k4, (2, 16, 16, 8), jnp.float32)
    wb = jax.random.normal(k5, (16, 8, 3, 3), jnp.float32) * 0.1
    gb = 1.0 + 0.02 * jax.random.normal(k6, (16,), jnp.float32)
    bb = 0.1 * jax.random.normal(k7, (16,), jnp.float32)
    wmat_b = _pack_conv_w(wb)
    y_1blk = conv2d_t(xb, wmat_b, None, kh=3, kw=3, stride=1, padding=1,
                      bn=(gb, bb), relu=True, out_dtype=jnp.float32)
    y_grid = conv2d_t(xb, wmat_b, None, kh=3, kw=3, stride=1, padding=1,
                      bn=(gb, bb), relu=True, out_dtype=jnp.float32, tm=128)
    assert bool(jnp.allclose(y_1blk, y_grid, atol=1e-2, rtol=1e-2)), \
        float(jnp.max(jnp.abs(y_1blk - y_grid)))

    # --- check 3: plain gridded epilogue (bias + ReLU) with tiled M ---------
    bias_c = 0.1 * jax.random.normal(k6, (16,), jnp.float32)
    z_1blk = conv2d_t(xb, wmat_b, bias_c, kh=3, kw=3, stride=1, padding=1,
                      relu=True, out_dtype=jnp.float32)
    z_grid = conv2d_t(xb, wmat_b, bias_c, kh=3, kw=3, stride=1, padding=1,
                      relu=True, out_dtype=jnp.float32, tm=128)
    assert bool(jnp.allclose(z_1blk, z_grid, atol=1e-3, rtol=1e-3))

    print("KERNEL_OK")
</pallas_src>

<mosaic_0001>
module attributes {stable_mosaic.version = 11 : i64} {
  func.func @_conv_gemm_kernel(%arg0: i32, %arg1: memref<1x9xbf16, #tpu.memory_space<vmem>>, %arg2: memref<9x512xbf16, #tpu.memory_space<vmem>>, %arg3: memref<1x1xf32, #tpu.memory_space<vmem>>, %arg4: memref<1x512xbf16, #tpu.memory_space<vmem>>) attributes {dimension_semantics = [#tpu.dimension_semantics<parallel>], iteration_bounds = array<i64: 1>, scalar_prefetch = 0 : i64, scratch_operands = 0 : i64, tpu.core_type = #tpu.core_type<tc>, window_params = [{pipeline_mode = #tpu.pipeline_mode<synchronous>, transform_indices = @transform_0, window_bounds = array<i64: 1, 9>}, {transform_indices = @transform_1, window_bounds = array<i64: 9, 512>}, {pipeline_mode = #tpu.pipeline_mode<synchronous>, transform_indices = @transform_2, window_bounds = array<i64: 1, 1>}, {transform_indices = @transform_3, window_bounds = array<i64: 1, 512>}]} {
    %c0 = arith.constant 0 : index
    %c0_0 = arith.constant 0 : index
    %0 = vector.load %arg1[%c0, %c0_0] : memref<1x9xbf16, #tpu.memory_space<vmem>>, vector<1x9xbf16>
    %c0_1 = arith.constant 0 : index
    %c0_2 = arith.constant 0 : index
    %1 = vector.load %arg2[%c0_1, %c0_2] : memref<9x512xbf16, #tpu.memory_space<vmem>>, vector<9x512xbf16>
    %cst = arith.constant dense<0.000000e+00> : vector<1x512xf32>
    %2 = tpu.matmul %0, %1, %cst {dimension_numbers = #tpu.dot_dimension_numbers<[1], [0], [0], [1], [0, 0, 1, 1], [], []>} : vector<1x9xbf16>, vector<9x512xbf16>, vector<1x512xf32> -> vector<1x512xf32>
    %c0_3 = arith.constant 0 : index
    %c0_4 = arith.constant 0 : index
    %3 = vector.load %arg3[%c0_3, %c0_4] : memref<1x1xf32, #tpu.memory_space<vmem>>, vector<1x1xf32>
    %4 = vector.broadcast %3 : vector<1x1xf32> to vector<1x512xf32>
    %5 = arith.addf %2, %4 : vector<1x512xf32>
    %6 = arith.truncf %5 : vector<1x512xf32> to vector<1x512xbf16>
    %c0_5 = arith.constant 0 : index
    %c0_6 = arith.constant 0 : index
    %7 = vector.load %arg4[%c0_5, %c0_6] : memref<1x512xbf16, #tpu.memory_space<vmem>>, vector<1x512xbf16>
    tpu.vector_store %arg4[%c0_5, %c0_6], %6 {strides = array<i32>} : memref<1x512xbf16, #tpu.memory_space<vmem>>, vector<1x512xbf16>,
    return
  }
  func.func @transform_0(%arg0: i32) -> (i32, i32) {
    %c0_i32 = arith.constant 0 : i32
    %c0_i32_0 = arith.constant 0 : i32
    %c0_i32_1 = arith.constant 0 : i32
    return %c0_i32, %c0_i32_0 : i32, i32
  }
  func.func @transform_1(%arg0: i32) -> (i32, i32) {
    %c0_i32 = arith.constant 0 : i32
    %c0_i32_0 = arith.constant 0 : i32
    return %c0_i32, %arg0 : i32, i32
  }
  func.func @transform_2(%arg0: i32) -> (i32, i32) {
    %c0_i32 = arith.constant 0 : i32
    %c0_i32_0 = arith.constant 0 : i32
    %c0_i32_1 = arith.constant 0 : i32
    return %c0_i32, %c0_i32_0 : i32, i32
  }
  func.func @transform_3(%arg0: i32) -> (i32, i32) {
    %c0_i32 = arith.constant 0 : i32
    %c0_i32_0 = arith.constant 0 : i32
    return %c0_i32, %arg0 : i32, i32
  }
}

module attributes {stable_mosaic.version = 11 : i64} {
  func.func @_conv_gemm_kernel(%arg0: i32, %arg1: memref<16x18xbf16, #tpu.memory_space<vmem>>, %arg2: memref<18x128xbf16, #tpu.memory_space<vmem>>, %arg3: memref<16x1xf32, #tpu.memory_space<vmem>>, %arg4: memref<16x1xf32, #tpu.memory_space<vmem>>, %arg5: memref<16x128xbf16, #tpu.memory_space<vmem>>) attributes {dimension_semantics = [#tpu.dimension_semantics<parallel>], iteration_bounds = array<i64: 1>, scalar_prefetch = 0 : i64, scratch_operands = 0 : i64, tpu.core_type = #tpu.core_type<tc>, window_params = [{pipeline_mode = #tpu.pipeline_mode<synchronous>, transform_indices = @transform_0, window_bounds = array<i64: 16, 18>}, {transform_indices = @transform_1, window_bounds = array<i64: 18, 128>}, {pipeline_mode = #tpu.pipeline_mode<synchronous>, transform_indices = @transform_2, window_bounds = array<i64: 16, 1>}, {pipeline_mode = #tpu.pipeline_mode<synchronous>, transform_indices = @transform_3, window_bounds = array<i64: 16, 1>}, {transform_indices = @transform_4, window_bounds = array<i64: 16, 128>}]} {
    %c0 = arith.constant 0 : index
    %c0_0 = arith.constant 0 : index
    %0 = vector.load %arg1[%c0, %c0_0] : memref<16x18xbf16, #tpu.memory_space<vmem>>, vector<16x18xbf16>
    %c0_1 = arith.constant 0 : index
    %c0_2 = arith.constant 0 : index
    %1 = vector.load %arg2[%c0_1, %c0_2] : memref<18x128xbf16, #tpu.memory_space<vmem>>, vector<18x128xbf16>
    %cst = arith.constant dense<0.000000e+00> : vector<16x128xf32>
    %2 = tpu.matmul %0, %1, %cst {dimension_numbers = #tpu.dot_dimension_numbers<[1], [0], [0], [1], [0, 0, 1, 1], [], []>} : vector<16x18xbf16>, vector<18x128xbf16>, vector<16x128xf32> -> vector<16x128xf32>
    %cst_3 = arith.constant dense<0.000000e+00> : vector<16xf32>
    %3 = vector.multi_reduction <add>, %2, %cst_3 [1] : vector<16x128xf32> to vector<16xf32>
    %4 = vector.shape_cast %3 : vector<16xf32> to vector<16x1xf32>
    %cst_4 = arith.constant 1.280000e+02 : f32
    %5 = vector.broadcast %cst_4 : f32 to vector<16x1xf32>
    %6 = arith.divf %4, %5 : vector<16x1xf32>
    %7 = vector.broadcast %6 : vector<16x1xf32> to vector<16x128xf32>
    %8 = arith.subf %2, %7 : vector<16x128xf32>
    %9 = arith.mulf %8, %8 : vector<16x128xf32>
    %cst_5 = arith.constant dense<0.000000e+00> : vector<16xf32>
    %10 = vector.multi_reduction <add>, %9, %cst_5 [1] : vector<16x128xf32> to vector<16xf32>
    %11 = vector.shape_cast %10 : vector<16xf32> to vector<16x1xf32>
    %cst_6 = arith.constant 1.280000e+02 : f32
    %12 = vector.broadcast %cst_6 : f32 to vector<16x1xf32>
    %13 = arith.divf %11, %12 : vector<16x1xf32>
    %c0_7 = arith.constant 0 : index
    %c0_8 = arith.constant 0 : index
    %14 = vector.load %arg3[%c0_7, %c0_8] : memref<16x1xf32, #tpu.memory_space<vmem>>, vector<16x1xf32>
    %cst_9 = arith.constant 9.99999974E-6 : f32
    %15 = vector.broadcast %cst_9 : f32 to vector<16x1xf32>
    %16 = arith.addf %13, %15 : vector<16x1xf32>
    %17 = math.rsqrt %16 : vector<16x1xf32>
    %18 = arith.mulf %14, %17 : vector<16x1xf32>
    %c0_10 = arith.constant 0 : index
    %c0_11 = arith.constant 0 : index
    %19 = vector.load %arg4[%c0_10, %c0_11] : memref<16x1xf32, #tpu.memory_space<vmem>>, vector<16x1xf32>
    %20 = vector.broadcast %18 : vector<16x1xf32> to vector<16x128xf32>
    %21 = arith.mulf %8, %20 : vector<16x128xf32>
    %22 = vector.broadcast %19 : vector<16x1xf32> to vector<16x128xf32>
    %23 = arith.addf %21, %22 : vector<16x128xf32>
    %cst_12 = arith.constant 0.000000e+00 : f32
    %24 = vector.broadcast %cst_12 : f32 to vector<16x128xf32>
    %25 = arith.maximumf %23, %24 : vector<16x128xf32>
    %26 = arith.truncf %25 : vector<16x128xf32> to vector<16x128xbf16>
    %c0_13 = arith.constant 0 : index
    %c0_14 = arith.constant 0 : index
    %27 = vector.load %arg5[%c0_13, %c0_14] : memref<16x128xbf16, #tpu.memory_space<vmem>>, vector<16x128xbf16>
    tpu.vector_store %arg5[%c0_13, %c0_14], %26 {strides = array<i32>} : memref<16x128xbf16, #tpu.memory_space<vmem>>, vector<16x128xbf16>,
    return
  }
  func.func @transform_0(%arg0: i32) -> (i32, i32) {
    %c0_i32 = arith.constant 0 : i32
    %c0_i32_0 = arith.constant 0 : i32
    %c0_i32_1 = arith.constant 0 : i32
    return %c0_i32, %c0_i32_0 : i32, i32
  }
  func.func @transform_1(%arg0: i32) -> (i32, i32) {
    %c0_i32 = arith.constant 0 : i32
    %c0_i32_0 = arith.constant 0 : i32
    return %c0_i32, %arg0 : i32, i32
  }
  func.func @transform_2(%arg0: i32) -> (i32, i32) {
    %c0_i32 = arith.constant 0 : i32
    %c0_i32_0 = arith.constant 0 : i32
    %c0_i32_1 = arith.constant 0 : i32
    return %c0_i32, %c0_i32_0 : i32, i32
  }
  func.func @transform_3(%arg0: i32) -> (i32, i32) {
    %c0_i32 = arith.constant 0 : i32
    %c0_i32_0 = arith.constant 0 : i32
    %c0_i32_1 = arith.constant 0 : i32
    return %c0_i32, %c0_i32_0 : i32, i32
  }
  func.func @transform_4(%arg0: i32) -> (i32, i32) {
    %c0_i32 = arith.constant 0 : i32
    %c0_i32_0 = arith.constant 0 : i32
    return %c0_i32, %arg0 : i32, i32
  }
}

module attributes {stable_mosaic.version = 11 : i64} {
  func.func @_conv_gemm_kernel(%arg0: i32, %arg1: memref<32x144xbf16, #tpu.memory_space<vmem>>, %arg2: memref<144x32xbf16, #tpu.memory_space<vmem>>, %arg3: memref<32x1xf32, #tpu.memory_space<vmem>>, %arg4: memref<32x1xf32, #tpu.memory_space<vmem>>, %arg5: memref<32x32xbf16, #tpu.memory_space<vmem>>) attributes {dimension_semantics = [#tpu.dimension_semantics<parallel>], iteration_bounds = array<i64: 1>, scalar_prefetch = 0 : i64, scratch_operands = 0 : i64, tpu.core_type = #tpu.core_type<tc>, window_params = [{pipeline_mode = #tpu.pipeline_mode<synchronous>, transform_indices = @transform_0, window_bounds = array<i64: 32, 144>}, {transform_indices = @transform_1, window_bounds = array<i64: 144, 32>}, {pipeline_mode = #tpu.pipeline_mode<synchronous>, transform_indices = @transform_2, window_bounds = array<i64: 32, 1>}, {pipeline_mode = #tpu.pipeline_mode<synchronous>, transform_indices = @transform_3, window_bounds = array<i64: 32, 1>}, {transform_indices = @transform_4, window_bounds = array<i64: 32, 32>}]} {
    %c0 = arith.constant 0 : index
    %c0_0 = arith.constant 0 : index
    %0 = vector.load %arg1[%c0, %c0_0] : memref<32x144xbf16, #tpu.memory_space<vmem>>, vector<32x144xbf16>
    %c0_1 = arith.constant 0 : index
    %c0_2 = arith.constant 0 : index
    %1 = vector.load %arg2[%c0_1, %c0_2] : memref<144x32xbf16, #tpu.memory_space<vmem>>, vector<144x32xbf16>
    %cst = arith.constant dense<0.000000e+00> : vector<32x32xf32>
    %2 = tpu.matmul %0, %1, %cst {dimension_numbers = #tpu.dot_dimension_numbers<[1], [0], [0], [1], [0, 0, 1, 1], [], []>} : vector<32x144xbf16>, vector<144x32xbf16>, vector<32x32xf32> -> vector<32x32xf32>
    %cst_3 = arith.constant dense<0.000000e+00> : vector<32xf32>
    %3 = vector.multi_reduction <add>, %2, %cst_3 [1] : vector<32x32xf32> to vector<32xf32>
    %4 = vector.shape_cast %3 : vector<32xf32> to vector<32x1xf32>
    %cst_4 = arith.constant 3.200000e+01 : f32
    %5 = vector.broadcast %cst_4 : f32 to vector<32x1xf32>
    %6 = arith.divf %4, %5 : vector<32x1xf32>
    %7 = vector.broadcast %6 : vector<32x1xf32> to vector<32x32xf32>
    %8 = arith.subf %2, %7 : vector<32x32xf32>
    %9 = arith.mulf %8, %8 : vector<32x32xf32>
    %cst_5 = arith.constant dense<0.000000e+00> : vector<32xf32>
    %10 = vector.multi_reduction <add>, %9, %cst_5 [1] : vector<32x32xf32> to vector<32xf32>
    %11 = vector.shape_cast %10 : vector<32xf32> to vector<32x1xf32>
    %cst_6 = arith.constant 3.200000e+01 : f32
    %12 = vector.broadcast %cst_6 : f32 to vector<32x1xf32>
    %13 = arith.divf %11, %12 : vector<32x1xf32>
    %c0_7 = arith.constant 0 : index
    %c0_8 = arith.constant 0 : index
    %14 = vector.load %arg3[%c0_7, %c0_8] : memref<32x1xf32, #tpu.memory_space<vmem>>, vector<32x1xf32>
    %cst_9 = arith.constant 9.99999974E-6 : f32
    %15 = vector.broadcast %cst_9 : f32 to vector<32x1xf32>
    %16 = arith.addf %13, %15 : vector<32x1xf32>
    %17 = math.rsqrt %16 : vector<32x1xf32>
    %18 = arith.mulf %14, %17 : vector<32x1xf32>
    %c0_10 = arith.constant 0 : index
    %c0_11 = arith.constant 0 : index
    %19 = vector.load %arg4[%c0_10, %c0_11] : memref<32x1xf32, #tpu.memory_space<vmem>>, vector<32x1xf32>
    %20 = vector.broadcast %18 : vector<32x1xf32> to vector<32x32xf32>
    %21 = arith.mulf %8, %20 : vector<32x32xf32>
    %22 = vector.broadcast %19 : vector<32x1xf32> to vector<32x32xf32>
    %23 = arith.addf %21, %22 : vector<32x32xf32>
    %cst_12 = arith.constant 0.000000e+00 : f32
    %24 = vector.broadcast %cst_12 : f32 to vector<32x32xf32>
    %25 = arith.maximumf %23, %24 : vector<32x32xf32>
    %26 = arith.truncf %25 : vector<32x32xf32> to vector<32x32xbf16>
    %c0_13 = arith.constant 0 : index
    %c0_14 = arith.constant 0 : index
    %27 = vector.load %arg5[%c0_13, %c0_14] : memref<32x32xbf16, #tpu.memory_space<vmem>>, vector<32x32xbf16>
    tpu.vector_store %arg5[%c0_13, %c0_14], %26 {strides = array<i32>} : memref<32x32xbf16, #tpu.memory_space<vmem>>, vector<32x32xbf16>,
    return
  }
  func.func @transform_0(%arg0: i32) -> (i32, i32) {
    %c0_i32 = arith.constant 0 : i32
    %c0_i32_0 = arith.constant 0 : i32
    %c0_i32_1 = arith.constant 0 : i32
    return %c0_i32, %c0_i32_0 : i32, i32
  }
  func.func @transform_1(%arg0: i32) -> (i32, i32) {
    %c0_i32 = arith.constant 0 : i32
    %c0_i32_0 = arith.constant 0 : i32
    return %c0_i32, %arg0 : i32, i32
  }
  func.func @transform_2(%arg0: i32) -> (i32, i32) {
    %c0_i32 = arith.constant 0 : i32
    %c0_i32_0 = arith.constant 0 : i32
    %c0_i32_1 = arith.constant 0 : i32
    return %c0_i32, %c0_i32_0 : i32, i32
  }
  func.func @transform_3(%arg0: i32) -> (i32, i32) {
    %c0_i32 = arith.constant 0 : i32
    %c0_i32_0 = arith.constant 0 : i32
    %c0_i32_1 = arith.constant 0 : i32
    return %c0_i32, %c0_i32_0 : i32, i32
  }
  func.func @transform_4(%arg0: i32) -> (i32, i32) {
    %c0_i32 = arith.constant 0 : i32
    %c0_i32_0 = arith.constant 0 : i32
    return %c0_i32, %arg0 : i32, i32
  }
}

module attributes {stable_mosaic.version = 11 : i64} {
  func.func @_conv_gemm_kernel(%arg0: i32, %arg1: memref<64x288xbf16, #tpu.memory_space<vmem>>, %arg2: memref<288x32xbf16, #tpu.memory_space<vmem>>, %arg3: memref<16x1xf32, #tpu.memory_space<vmem>>, %arg4: memref<16x1xf32, #tpu.memory_space<vmem>>, %arg5: memref<64x32xbf16, #tpu.memory_space<vmem>>, %arg6: memref<64x32xbf16, #tpu.memory_space<vmem>>) attributes {dimension_semantics = [#tpu.dimension_semantics<parallel>], iteration_bounds = array<i64: 1>, scalar_prefetch = 0 : i64, scratch_operands = 0 : i64, tpu.core_type = #tpu.core_type<tc>, window_params = [{pipeline_mode = #tpu.pipeline_mode<synchronous>, transform_indices = @transform_0, window_bounds = array<i64: 64, 288>}, {transform_indices = @transform_1, window_bounds = array<i64: 288, 32>}, {pipeline_mode = #tpu.pipeline_mode<synchronous>, transform_indices = @transform_2, window_bounds = array<i64: 16, 1>}, {pipeline_mode = #tpu.pipeline_mode<synchronous>, transform_indices = @transform_3, window_bounds = array<i64: 16, 1>}, {transform_indices = @transform_4, window_bounds = array<i64: 64, 32>}, {transform_indices = @transform_5, window_bounds = array<i64: 64, 32>}]} {
    %c0 = arith.constant 0 : index
    %c0_0 = arith.constant 0 : index
    %0 = vector.load %arg1[%c0, %c0_0] : memref<64x288xbf16, #tpu.memory_space<vmem>>, vector<64x288xbf16>
    %c0_1 = arith.constant 0 : index
    %c0_2 = arith.constant 0 : index
    %1 = vector.load %arg2[%c0_1, %c0_2] : memref<288x32xbf16, #tpu.memory_space<vmem>>, vector<288x32xbf16>
    %cst = arith.constant dense<0.000000e+00> : vector<64x32xf32>
    %2 = tpu.matmul %0, %1, %cst {dimension_numbers = #tpu.dot_dimension_numbers<[1], [0], [0], [1], [0, 0, 1, 1], [], []>} : vector<64x288xbf16>, vector<288x32xbf16>, vector<64x32xf32> -> vector<64x32xf32>
    %cst_3 = arith.constant dense<0.000000e+00> : vector<64xf32>
    %3 = vector.multi_reduction <add>, %2, %cst_3 [1] : vector<64x32xf32> to vector<64xf32>
    %4 = vector.shape_cast %3 : vector<64xf32> to vector<64x1xf32>
    %5 = vector.extract_strided_slice %4 {offsets = [0, 0], sizes = [16, 1], strides = [1, 1]} : vector<64x1xf32> to vector<16x1xf32>
    %6 = vector.extract_strided_slice %4 {offsets = [16, 0], sizes = [16, 1], strides = [1, 1]} : vector<64x1xf32> to vector<16x1xf32>
    %7 = arith.addf %5, %6 : vector<16x1xf32>
    %8 = vector.extract_strided_slice %4 {offsets = [32, 0], sizes = [16, 1], strides = [1, 1]} : vector<64x1xf32> to vector<16x1xf32>
    %9 = arith.addf %7, %8 : vector<16x1xf32>
    %10 = vector.extract_strided_slice %4 {offsets = [48, 0], sizes = [16, 1], strides = [1, 1]} : vector<64x1xf32> to vector<16x1xf32>
    %11 = arith.addf %9, %10 : vector<16x1xf32>
    %cst_4 = arith.constant 1.280000e+02 : f32
    %12 = vector.broadcast %cst_4 : f32 to vector<16x1xf32>
    %13 = arith.divf %11, %12 : vector<16x1xf32>
    %14 = tpu.concatenate %13, %13, %13, %13 in 0 : vector<16x1xf32>, vector<16x1xf32>, vector<16x1xf32>, vector<16x1xf32> -> vector<64x1xf32>
    %15 = vector.broadcast %14 : vector<64x1xf32> to vector<64x32xf32>
    %16 = arith.subf %2, %15 : vector<64x32xf32>
    %17 = arith.mulf %16, %16 : vector<64x32xf32>
    %cst_5 = arith.constant dense<0.000000e+00> : vector<64xf32>
    %18 = vector.multi_reduction <add>, %17, %cst_5 [1] : vector<64x32xf32> to vector<64xf32>
    %19 = vector.shape_cast %18 : vector<64xf32> to vector<64x1xf32>
    %20 = vector.extract_strided_slice %19 {offsets = [0, 0], sizes = [16, 1], strides = [1, 1]} : vector<64x1xf32> to vector<16x1xf32>
    %21 = vector.extract_strided_slice %19 {offsets = [16, 0], sizes = [16, 1], strides = [1, 1]} : vector<64x1xf32> to vector<16x1xf32>
    %22 = arith.addf %20, %21 : vector<16x1xf32>
    %23 = vector.extract_strided_slice %19 {offsets = [32, 0], sizes = [16, 1], strides = [1, 1]} : vector<64x1xf32> to vector<16x1xf32>
    %24 = arith.addf %22, %23 : vector<16x1xf32>
    %25 = vector.extract_strided_slice %19 {offsets = [48, 0], sizes = [16, 1], strides = [1, 1]} : vector<64x1xf32> to vector<16x1xf32>
    %26 = arith.addf %24, %25 : vector<16x1xf32>
    %cst_6 = arith.constant 1.280000e+02 : f32
    %27 = vector.broadcast %cst_6 : f32 to vector<16x1xf32>
    %28 = arith.divf %26, %27 : vector<16x1xf32>
    %c0_7 = arith.constant 0 : index
    %c0_8 = arith.constant 0 : index
    %29 = vector.load %arg3[%c0_7, %c0_8] : memref<16x1xf32, #tpu.memory_space<vmem>>, vector<16x1xf32>
    %cst_9 = arith.constant 9.99999974E-6 : f32
    %30 = vector.broadcast %cst_9 : f32 to vector<16x1xf32>
    %31 = arith.addf %28, %30 : vector<16x1xf32>
    %32 = math.rsqrt %31 : vector<16x1xf32>
    %33 = arith.mulf %29, %32 : vector<16x1xf32>
    %34 = tpu.concatenate %33, %33, %33, %33 in 0 : vector<16x1xf32>, vector<16x1xf32>, vector<16x1xf32>, vector<16x1xf32> -> vector<64x1xf32>
    %c0_10 = arith.constant 0 : index
    %c0_11 = arith.constant 0 : index
    %35 = vector.load %arg4[%c0_10, %c0_11] : memref<16x1xf32, #tpu.memory_space<vmem>>, vector<16x1xf32>
    %36 = tpu.concatenate %35, %35, %35, %35 in 0 : vector<16x1xf32>, vector<16x1xf32>, vector<16x1xf32>, vector<16x1xf32> -> vector<64x1xf32>
    %37 = vector.broadcast %34 : vector<64x1xf32> to vector<64x32xf32>
    %38 = arith.mulf %16, %37 : vector<64x32xf32>
    %39 = vector.broadcast %36 : vector<64x1xf32> to vector<64x32xf32>
    %40 = arith.addf %38, %39 : vector<64x32xf32>
    %cst_12 = arith.constant 0.000000e+00 : f32
    %41 = vector.broadcast %cst_12 : f32 to vector<64x32xf32>
    %42 = arith.maximumf %40, %41 : vector<64x32xf32>
    %c0_13 = arith.constant 0 : index
    %c0_14 = arith.constant 0 : index
    %43 = vector.load %arg5[%c0_13, %c0_14] : memref<64x32xbf16, #tpu.memory_space<vmem>>, vector<64x32xbf16>
    %44 = arith.extf %43 : vector<64x32xbf16> to vector<64x32xf32>
    %45 = arith.addf %42, %44 : vector<64x32xf32>
    %46 = arith.truncf %45 : vector<64x32xf32> to vector<64x32xbf16>
    %c0_15 = arith.constant 0 : index
    %c0_16 = arith.constant 0 : index
    %47 = vector.load %arg6[%c0_15, %c0_16] : memref<64x32xbf16, #tpu.memory_space<vmem>>, vector<64x32xbf16>
    tpu.vector_store %arg6[%c0_15, %c0_16], %46 {strides = array<i32>} : memref<64x32xbf16, #tpu.memory_space<vmem>>, vector<64x32xbf16>,
    return
  }
  func.func @transform_0(%arg0: i32) -> (i32, i32) {
    %c0_i32 = arith.constant 0 : i32
    %c0_i32_0 = arith.constant 0 : i32
    %c0_i32_1 = arith.constant 0 : i32
    return %c0_i32, %c0_i32_0 : i32, i32
  }
  func.func @transform_1(%arg0: i32) -> (i32, i32) {
    %c0_i32 = arith.constant 0 : i32
    %c0_i32_0 = arith.constant 0 : i32
    return %c0_i32, %arg0 : i32, i32
  }
  func.func @transform_2(%arg0: i32) -> (i32, i32) {
    %c0_i32 = arith.constant 0 : i32
    %c0_i32_0 = arith.constant 0 : i32
    %c0_i32_1 = arith.constant 0 : i32
    return %c0_i32, %c0_i32_0 : i32, i32
  }
  func.func @transform_3(%arg0: i32) -> (i32, i32) {
    %c0_i32 = arith.constant 0 : i32
    %c0_i32_0 = arith.constant 0 : i32
    %c0_i32_1 = arith.constant 0 : i32
    return %c0_i32, %c0_i32_0 : i32, i32
  }
  func.func @transform_4(%arg0: i32) -> (i32, i32) {
    %c0_i32 = arith.constant 0 : i32
    %c0_i32_0 = arith.constant 0 : i32
    return %c0_i32, %arg0 : i32, i32
  }
  func.func @transform_5(%arg0: i32) -> (i32, i32) {
    %c0_i32 = arith.constant 0 : i32
    %c0_i32_0 = arith.constant 0 : i32
    return %c0_i32, %arg0 : i32, i32
  }
}

module attributes {stable_mosaic.version = 11 : i64} {
  func.func @_conv_gemm_kernel(%arg0: i32, %arg1: memref<4x144xbf16, #tpu.memory_space<vmem>>, %arg2: memref<144x128xbf16, #tpu.memory_space<vmem>>, %arg3: memref<4x1xf32, #tpu.memory_space<vmem>>, %arg4: memref<4x128xf32, #tpu.memory_space<vmem>>) attributes {dimension_semantics = [#tpu.dimension_semantics<parallel>], iteration_bounds = array<i64: 1>, scalar_prefetch = 0 : i64, scratch_operands = 0 : i64, tpu.core_type = #tpu.core_type<tc>, window_params = [{pipeline_mode = #tpu.pipeline_mode<synchronous>, transform_indices = @transform_0, window_bounds = array<i64: 4, 144>}, {transform_indices = @transform_1, window_bounds = array<i64: 144, 128>}, {pipeline_mode = #tpu.pipeline_mode<synchronous>, transform_indices = @transform_2, window_bounds = array<i64: 4, 1>}, {transform_indices = @transform_3, window_bounds = array<i64: 4, 128>}]} {
    %c0 = arith.constant 0 : index
    %c0_0 = arith.constant 0 : index
    %0 = vector.load %arg1[%c0, %c0_0] : memref<4x144xbf16, #tpu.memory_space<vmem>>, vector<4x144xbf16>
    %c0_1 = arith.constant 0 : index
    %c0_2 = arith.constant 0 : index
    %1 = vector.load %arg2[%c0_1, %c0_2] : memref<144x128xbf16, #tpu.memory_space<vmem>>, vector<144x128xbf16>
    %cst = arith.constant dense<0.000000e+00> : vector<4x128xf32>
    %2 = tpu.matmul %0, %1, %cst {dimension_numbers = #tpu.dot_dimension_numbers<[1], [0], [0], [1], [0, 0, 1, 1], [], []>} : vector<4x144xbf16>, vector<144x128xbf16>, vector<4x128xf32> -> vector<4x128xf32>
    %c0_3 = arith.constant 0 : index
    %c0_4 = arith.constant 0 : index
    %3 = vector.load %arg3[%c0_3, %c0_4] : memref<4x1xf32, #tpu.memory_space<vmem>>, vector<4x1xf32>
    %4 = vector.broadcast %3 : vector<4x1xf32> to vector<4x128xf32>
    %5 = arith.addf %2, %4 : vector<4x128xf32>
    %c0_5 = arith.constant 0 : index
    %c0_6 = arith.constant 0 : index
    %6 = vector.load %arg4[%c0_5, %c0_6] : memref<4x128xf32, #tpu.memory_space<vmem>>, vector<4x128xf32>
    tpu.vector_store %arg4[%c0_5, %c0_6], %5 {strides = array<i32>} : memref<4x128xf32, #tpu.memory_space<vmem>>, vector<4x128xf32>,
    return
  }
  func.func @transform_0(%arg0: i32) -> (i32, i32) {
    %c0_i32 = arith.constant 0 : i32
    %c0_i32_0 = arith.constant 0 : i32
    %c0_i32_1 = arith.constant 0 : i32
    return %c0_i32, %c0_i32_0 : i32, i32
  }
  func.func @transform_1(%arg0: i32) -> (i32, i32) {
    %c0_i32 = arith.constant 0 : i32
    %c0_i32_0 = arith.constant 0 : i32
    return %c0_i32, %arg0 : i32, i32
  }
  func.func @transform_2(%arg0: i32) -> (i32, i32) {
    %c0_i32 = arith.constant 0 : i32
    %c0_i32_0 = arith.constant 0 : i32
    %c0_i32_1 = arith.constant 0 : i32
    return %c0_i32, %c0_i32_0 : i32, i32
  }
  func.func @transform_3(%arg0: i32) -> (i32, i32) {
    %c0_i32 = arith.constant 0 : i32
    %c0_i32_0 = arith.constant 0 : i32
    return %c0_i32, %arg0 : i32, i32
  }
}

</mosaic_0001>

<bundles_post_ra>
// kernel: aev4_forward.5
= control target key start
LH: loop header
LB: loop body
LE: loop exit
PB: predicated region body
PF: predicated region fallthrough
CT: control target
= control target key end

     0   :  { %vm52_vm0 = vcmask 1043456   ;;  %vm53_vm1 = vcmask 1044480   ;;  %v223_v1 = vmov 0   ;;  %v224_v3 = vmov 65535   ;;  %s282_s1 = inlined_call_operand.vmem [shape: bf16[9,512], index: 1, kind: input, shape index: {}]   ;;  %s283_s2 = inlined_call_operand.<no memory space> [shape: f32[1,1], index: 2, kind: input, shape index: {}]   ;;  %s284_s0 = inlined_call_operand.vmem [shape: bf16[1,9], index: 0, kind: input, shape index: {}]   ;;  %s285_s3 = inlined_call_operand.vmem [shape: bf16[1,512], index: 3, kind: output, shape index: {}]  }
   0x1   :  { %v217_v0 = vld [vmem:[%s282_s1 + $0x4] ss:$16 sps:$4 sm:$0x1f]   ;;  %100 = vmatprep.mubr.bf16.mxu0 %v223_v1  ;;  %141 = vmatprep.mubr.bf16.mxu1 %v223_v1  ;;  %v8_v2 = vstv %s283_s2  ;;  %v54_v4 = vsel %vm52_vm0, 4294967295, %v224_v3  ;;  %v17_v13 = vld [vmem:[%s284_s0] sm:$0x1]  ;;  %v28_v15 = vlaneseq }
   0x2   :  { %216 = vset.pattern.permute.xlu0 %v223_v1  ;;  %9 = vst [vmem:[#allocation2] sm:$0x1] %v8_v2  ;;  %v55_v5 = vsel %vm53_vm1, %v54_v4, 0  ;;  %v219_v6 = vld [vmem:[%s282_s1 + $0xc] ss:$16 sps:$4 sm:$0x1f]  }
   0x3   :  { %v60_v7 = vand.u32 %v217_v0, %v55_v5  ;;  %v221_v8 = vld [vmem:[%s282_s1] ss:$16 sps:$4 sm:$0x1f]   ;;  %v222_v9 = vld [vmem:[%s282_s1 + $0x8] ss:$16 sps:$4 sm:$0x1f]   ;;  %v66_v10 = vand.u32 %v219_v6, %v55_v5 }
   0x4   :  { %v57_v11 = vand.u32 %v221_v8, %v55_v5  ;;  %v63_v12 = vand.u32 %v222_v9, %v55_v5  ;;  %vm48_vm2 = vcmask 72704   ;;  %v29_v16 = vshrl.u32 %v28_v15, 7  ;;  %v198_v43 = vld [vmem:[%s285_s3] sm:$0xf] }
   0x5   :  { %82 = vmatprep.subr.bf16.mxu0 %v60_v7  ;;  %123 = vmatprep.subr.bf16.mxu1 %v66_v10  ;;  %v225_v17 = vmov 1966171168   ;;  %vm183_vm3 = vcmask 1040384   ;;  %vm184_vm4 = vsmask.f32 256  ;;  %vm186_vm5 = vcmask 1041409  }
   0x6   :  { %83 = vmatpush1.bf16.msra.mxu0 %v57_v11  ;;  %124 = vmatpush1.bf16.msra.mxu1 %v63_v12  ;;  %v161_v18 = vunpack.c.l.s4 %v225_v17  ;;  %v30_v19 = vsub.s32 0, %v29_v16  ;;  %vm187_vm6 = vsmask.f32 1280  ;;  %vm264_vm7 = vmand %vm183_vm3, %vm184_vm4  ;;  %vm190_vm9 = vcmask 1042434  }
   0x7   :  { %vm268_vm8 = vmand %vm186_vm5, %vm187_vm6  ;;  %vm191_vm10 = vsmask.f32 2304  ;;  %vm194_vm13 = vcmask 1043459   ;;  %vm195_vm14 = vsmask.f32 3328 }
   0x8   :  { %v162_v21 = vunpack.c.0.s8 %v161_v18  ;;  %vm189_vm11 = vmor %vm268_vm8, %vm264_vm7 }
   0x9   :  { %v22_v14 = vld [vmem:[#allocation2] sm:$0x1]  ;;  %209 = vmatmul.mubr.msk.bf16.vlgmr.msra.gmra.mxu0 %vm48_vm2, %v17_v13  ;;  %210 = vmatmul.mubr.msk.bf16.vlgmr.msra.gmra.mxu1 %vm48_vm2, %v17_v13  ;;  %vm192_vm12 = vmand %vm190_vm9, %vm191_vm10 }
   0xa   :  { %25 = vperm.xlu0 %216, %v22_v14   ;;  %v165_v27 = vsub.s32 %v162_v21, %v29_v16  ;;  %vm193_vm15 = vmor %vm192_vm12, %vm189_vm11 }
   0xb   :  { %vm196_vm0 = vmand %vm194_vm13, %vm195_vm14 }
   0xc   :  { %vm197_vm1 = vmor %vm196_vm0, %vm193_vm15 }
  0x85   :  { %v26_v20 = vpop.permute.xlu0 %25 }
  0x86   :  { %v31_v23 = vrot.slane %v26_v20, %v30_v19 }
  0xc9   :  { %v102_v25 = vpop.f32.mrf.mxu0  ;;  %v143_v26 = vpop.f32.mrf.mxu1 }
  0xca   :  { %v103_v30 = vadd.f32 %v102_v25, %v31_v23  ;;  %v144_v31 = vadd.f32 %v143_v26, %v31_v23 }
  0xcb   :  { %v104_v28 = vpop.f32.mrf.mxu0  ;;  %v145_v29 = vpop.f32.mrf.mxu1 }
  0xcc   :  { %v105_v32 = vadd.f32 %v104_v28, %v31_v23  ;;  %v146_v33 = vadd.f32 %v145_v29, %v31_v23 }
  0xcd   :  { %v106_v34 = vpop.f32.mrf.mxu0  ;;  %v147_v35 = vpop.f32.mrf.mxu1 }
  0xce   :  { %v211_v36 = vpack.c.bf16 %v105_v32, %v103_v30  ;;  %v212_v37 = vpack.c.bf16 %v146_v33, %v144_v31 }
  0xcf   :  { %v107_v38 = vpop.f32.mrf.mxu0  ;;  %v148_v39 = vpop.f32.mrf.mxu1 }
  0xd0   :  { %v166_v40 = vrot.slane %v211_v36, %v165_v27  ;;  %v173_v41 = vrot.slane %v212_v37, %v165_v27 }
  0xd2   :  { %v174_v42 = vcombine.low %v166_v40, %v173_v41 }
  0xd4   :  { %v181_v44 = vrot.slane %v174_v42, %v165_v27 }
  0xd6   :  { %v199_v45 = vsel %vm197_vm1, %v181_v44, %v198_v43 }
  0xd7   :  { %200 = vst [vmem:[%s285_s3] sm:$0xf] %v199_v45 }

// kernel: aev4_forward.6
= control target key start
LH: loop header
LB: loop body
LE: loop exit
PB: predicated region body
PF: predicated region fallthrough
CT: control target
= control target key end

     0   :  { %vm41_vm0 = vcmask 1040384   ;;  %v189_v0 = vmov 0.0   ;;  %vm190_vm1 = vmmov 0   ;;  %vm37_vm2 = vcmask 146432   ;;  %s241_s1 = inlined_call_operand.vmem [shape: bf16[18,128], index: 1, kind: input, shape index: {}]   ;;  %s242_s0 = inlined_call_operand.vmem [shape: bf16[16,18], index: 0, kind: input, shape index: {}]   ;;  %s243_s3 = inlined_call_operand.vmem [shape: f32[16,1], index: 3, kind: input, shape index: {}]   ;;  %s244_s2 = inlined_call_operand.vmem [shape: f32[16,1], index: 2, kind: input, shape index: {}]   ;;  %s245_s4 = inlined_call_operand.vmem [shape: bf16[16,128], index: 4, kind: output, shape index: {}]  }
   0x1   :  { %169 = vmatprep.subr.bf16.mxu0 %v189_v0  ;;  %v182_v1 = vld [vmem:[%s241_s1 + $0x8] ss:$0 sps:$4 sm:$0x11]   ;;  %173 = vmatprep.mubr.msk.bf16.mxu0 %vm190_vm1, %v189_v0  ;;  %v183_v3 = vld [vmem:[%s241_s1] sm:$0xff]   ;;  %v191_v17 = vmov 0  }
   0x2   :  { %v43_v2 = vsel %vm41_vm0, %v182_v1, 0  ;;  %v184_v4 = vld [vmem:[%s242_s0] sm:$0xff]   ;;  %181 = vset.pattern.permute.xlu1 %v191_v17  ;;  %180 = vset.pattern.permute.xlu0 %v191_v17  ;;  %v104_v28 = vld [vmem:[%s244_s2 + $0x8] sm:$0xff] }
   0x3   :  { %170 = vmatpush3.bf16.msra.mxu0 %v43_v2  ;;  %v111_v18 = vld [vmem:[%s243_s3] sm:$0xff]  ;;  %v112_v31 = vld [vmem:[%s243_s3 + $0x8] sm:$0xff] }
   0x4   :  { %171 = vmatprep.subr.bf16.mxu0 %v189_v0  ;;  %v103_v25 = vld [vmem:[%s244_s2] sm:$0xff] }
   0x7   :  { %172 = vmatpush3.bf16.msra.mxu0 %v183_v3 }
   0xa   :  { %174 = vmatmul.mubr.msk.bf16.vlgmr.msra.gmra.mxu0 %vm37_vm2, %v184_v4 }
  0xca   :  { %v79_v5 = vpop.f32.mrf.mxu0 }
  0xcb   :  { %86 = vadd.xlane.f32.xlu0 %v79_v5 }
  0xcc   :  { %v175_v6 = vpop.f32.mrf.mxu0 }
  0xce   :  { %v82_v7 = vpop.f32.mrf.mxu0 }
  0xcf   :  { %88 = vadd.xlane.f32.xlu0 %v82_v7 }
  0xd0   :  { %v176_v8 = vpop.f32.mrf.mxu0 }
 0x154   :  { %v87_v9 = vpop.xlane.xlu0 %86 }
 0x155   :  { %v91_v10 = vmul.f32 0.0078125, %v87_v9 }
 0x157   :  { %v93_v11 = vsub.f32 %v79_v5, %v91_v10 }
 0x158   :  { %v89_v12 = vpop.xlane.xlu0 %88 }
 0x159   :  { %v92_v13 = vmul.f32 0.0078125, %v89_v12  ;;  %v95_v14 = vmul.f32 %v93_v11, %v93_v11 }
 0x15b   :  { %v94_v15 = vsub.f32 %v82_v7, %v92_v13  ;;  %97 = vadd.xlane.f32.xlu1 %v95_v14 }
 0x15d   :  { %v96_v16 = vmul.f32 %v94_v15, %v94_v15 }
 0x15f   :  { %99 = vadd.xlane.f32.xlu1 %v96_v16 }
 0x170   :  { %127 = vperm.xlu1 %181, %v111_v18  }
 0x1e4   :  { %v98_v19 = vpop.xlane.xlu1 %97 }
 0x1e5   :  { %v101_v20 = vmul.f32 0.0078125, %v98_v19 }
 0x1e7   :  { %v105_v21 = vadd.f32 1e-05, %v101_v20 }
 0x1e8   :  { %v100_v22 = vpop.xlane.xlu1 %99 }
 0x1e9   :  { %185 = vrsqrt.f32 %v105_v21  ;;  %v102_v23 = vmul.f32 0.0078125, %v100_v22 }
 0x1eb   :  { %v106_v24 = vadd.f32 1e-05, %v102_v23 }
 0x1ec   :  { %v128_v32 = vpop.permute.xlu1 %127 }
 0x1ed   :  { %187 = vrsqrt.f32 %v106_v24 }
 0x1f6   :  { %v186_v26 = vpop.eup %185 }
 0x1f7   :  { %v109_v27 = vmul.f32 %v186_v26, %v103_v25 }
 0x1f9   :  { %115 = vperm.xlu0 %180, %v109_v27  }
 0x1fa   :  { %v188_v29 = vpop.eup %187 }
 0x1fb   :  { %v110_v30 = vmul.f32 %v188_v29, %v104_v28 }
 0x1fd   :  { %120 = vperm.xlu1 %181, %v110_v30  }
 0x201   :  { %132 = vperm.xlu1 %181, %v112_v31  }
 0x274   :  { %v116_v33 = vpop.permute.xlu0 %115 }
 0x275   :  { %v123_v34 = vmul.f32 %v116_v33, %v93_v11 }
 0x277   :  { %v135_v36 = vadd.f32 %v128_v32, %v123_v34 }
 0x278   :  { %v121_v35 = vpop.permute.xlu1 %120 }
 0x279   :  { %v124_v37 = vmul.f32 %v121_v35, %v94_v15  ;;  %v137_v40 = vmax.f32 %v135_v36, 0.0 }
 0x27c   :  { %v133_v38 = vpop.permute.xlu1 %132 }
 0x27d   :  { %v136_v39 = vadd.f32 %v133_v38, %v124_v37 }
 0x27f   :  { %v138_v41 = vmax.f32 %v136_v39, 0.0 }
 0x281   :  { %v164_v42 = vpack.c.bf16 %v138_v41, %v137_v40 }
 0x283   :  { %165 = vst [vmem:[%s245_s4] sm:$0xff] %v164_v42  }

// kernel: aev4_forward.7
= control target key start
LH: loop header
LB: loop body
LE: loop exit
PB: predicated region body
PF: predicated region fallthrough
CT: control target
= control target key end

     0   :  { %v374_v0 = vmov 0   ;;  %vm112_vm0 = vcmask 130048   ;;  %vm168_vm1 = vcmask 261120   ;;  %vm298_vm2 = vcmask 257024   ;;  %s507_s1 = inlined_call_operand.vmem [shape: bf16[144,32], index: 1, kind: input, shape index: {}]   ;;  %s508_s0 = inlined_call_operand.vmem [shape: bf16[32,144], index: 0, kind: input, shape index: {}]   ;;  %s509_s3 = inlined_call_operand.vmem [shape: f32[32,1], index: 3, kind: input, shape index: {}]   ;;  %s510_s2 = inlined_call_operand.vmem [shape: f32[32,1], index: 2, kind: input, shape index: {}]   ;;  %s511_s4 = inlined_call_operand.vmem [shape: bf16[32,32], index: 4, kind: output, shape index: {}]  }
   0x1   :  { %119 = vmatprep.subr.bf16.mxu0 %v374_v0  ;;  %330 = vmatprep.subr.bf16.mxu1 %v374_v0  ;;  %v351_v1 = vld [vmem:[%s507_s1 + $0x38] sm:$0xff]   ;;  %v352_v2 = vld [vmem:[%s507_s1 + $0x30] sm:$0xff]   ;;  %v353_v3 = vld [vmem:[%s507_s1 + $0x28] sm:$0xff]  }
   0x2   :  { %350 = vset.pattern.permute.xlu1 %v374_v0  ;;  %349 = vset.pattern.permute.xlu0 %v374_v0  ;;  %v354_v4 = vld [vmem:[%s507_s1 + $0x20] sm:$0xff]   ;;  %v365_v6 = vld [vmem:[%s508_s0 + $0x14] ss:$8 sps:$4 sm:$0xff]   ;;  %v357_v9 = vld [vmem:[%s507_s1 + $0x8] sm:$0xff]  }
   0x3   :  { %120 = vmatpush1.bf16.msra.mxu0 %v351_v1  ;;  %339 = vmatpush1.bf16.msra.mxu1 %v351_v1  ;;  %v362_v5 = vld [vmem:[%s508_s0 + $0x4] ss:$8 sps:$4 sm:$0xff]   ;;  %v355_v7 = vld [vmem:[%s507_s1 + $0x18] sm:$0xff]   ;;  %v356_v8 = vld [vmem:[%s507_s1 + $0x10] sm:$0xff]  }
   0x4   :  { %121 = vmatprep.subr.bf16.mxu0 %v374_v0  ;;  %331 = vmatprep.subr.bf16.mxu1 %v374_v0  ;;  %v358_v10 = vld [vmem:[%s507_s1] sm:$0xff]   ;;  %v363_v13 = vld [vmem:[%s508_s0 + $0x10] ss:$8 sps:$4 sm:$0xff]   ;;  %v227_v47 = vld [vmem:[%s509_s3 + $0x8] sm:$0xff] }
   0x5   :  { %320 = vmatprep.mubr.msk.bf16.mxu0 %vm112_vm0, %v362_v5  ;;  %321 = vmatprep.mubr.msk.bf16.mxu1 %vm112_vm0, %v365_v6  ;;  %v359_v11 = vld [vmem:[%s507_s1 + $0x40] sm:$0xff]   ;;  %v228_v48 = vld [vmem:[%s509_s3 + $0x10] sm:$0xff] }
   0x6   :  { %v360_v12 = vld [vmem:[%s508_s0] ss:$8 sps:$4 sm:$0xff]  }
   0x7   :  { %122 = vmatpush1.bf16.msra.mxu0 %v352_v2  ;;  %340 = vmatpush1.bf16.msra.mxu1 %v352_v2  ;;  %v226_v46 = vld [vmem:[%s509_s3] sm:$0xff] }
   0x8   :  { %123 = vmatprep.subr.bf16.mxu0 %v374_v0  ;;  %332 = vmatprep.subr.bf16.mxu1 %v374_v0  ;;  %v210_v61 = vld [vmem:[%s510_s2] sm:$0xff] }
   0xb   :  { %124 = vmatpush1.bf16.msra.mxu0 %v353_v3  ;;  %341 = vmatpush1.bf16.msra.mxu1 %v353_v3 }
   0xc   :  { %125 = vmatprep.subr.bf16.mxu0 %v374_v0  ;;  %333 = vmatprep.subr.bf16.mxu1 %v374_v0 }
   0xf   :  { %126 = vmatpush1.bf16.msra.mxu0 %v354_v4  ;;  %342 = vmatpush1.bf16.msra.mxu1 %v354_v4  ;;  %v211_v4 = vld [vmem:[%s510_s2 + $0x8] sm:$0xff] }
  0x10   :  { %127 = vmatprep.subr.bf16.mxu0 %v374_v0  ;;  %334 = vmatprep.subr.bf16.mxu1 %v374_v0 }
  0x13   :  { %128 = vmatpush1.bf16.msra.mxu0 %v355_v7  ;;  %343 = vmatpush1.bf16.msra.mxu1 %v355_v7  ;;  %v213_v7 = vld [vmem:[%s510_s2 + $0x18] sm:$0xff] }
  0x14   :  { %129 = vmatprep.subr.bf16.mxu0 %v374_v0  ;;  %335 = vmatprep.subr.bf16.mxu1 %v374_v0 }
  0x17   :  { %130 = vmatpush1.bf16.msra.mxu0 %v356_v8  ;;  %344 = vmatpush1.bf16.msra.mxu1 %v356_v8 }
  0x18   :  { %131 = vmatprep.subr.bf16.mxu0 %v374_v0  ;;  %336 = vmatprep.subr.bf16.mxu1 %v374_v0 }
  0x1b   :  { %132 = vmatpush1.bf16.msra.mxu0 %v357_v9  ;;  %345 = vmatpush1.bf16.msra.mxu1 %v357_v9  ;;  %v229_v9 = vld [vmem:[%s509_s3 + $0x18] sm:$0xff] }
  0x1c   :  { %133 = vmatprep.subr.bf16.mxu0 %v374_v0  ;;  %337 = vmatprep.subr.bf16.mxu1 %v374_v0 }
  0x1f   :  { %134 = vmatpush1.bf16.msra.mxu0 %v358_v10  ;;  %346 = vmatpush1.bf16.msra.mxu1 %v358_v10 }
  0x20   :  { %149 = vmatprep.subr.bf16.mxu0 %v374_v0  ;;  %338 = vmatprep.subr.bf16.mxu1 %v374_v0  ;;  %v212_v0 = vld [vmem:[%s510_s2 + $0x10] sm:$0xff] }
  0x23   :  { %150 = vmatpush2.bf16.msra.mxu0 %v359_v11  ;;  %347 = vmatpush2.bf16.msra.mxu1 %v359_v11 }
  0x26   :  { %152 = vmatmul.mubr.bf16.vlgmr.msra.gmra.mxu0 %v360_v12  ;;  %160 = vmatmul.mubr.bf16.vlgmr.msra.gmra.mxu1 %v363_v13 }
  0xe6   :  { %v153_v14 = vpop.f32.mrf.mxu0  ;;  %v161_v15 = vpop.f32.mrf.mxu1 }
  0xe7   :  { %v175_v16 = vsel %vm168_vm1, %v161_v15, 0.0  ;;  %v169_v17 = vsel %vm168_vm1, %v153_v14, 0.0 }
  0xe8   :  { %176 = vadd.xlane.f32.xlu1 %v175_v16  ;;  %v163_v18 = vpop.f32.mrf.mxu1  ;;  %170 = vadd.xlane.f32.xlu0 %v169_v17  ;;  %v155_v19 = vpop.f32.mrf.mxu0 }
  0xea   :  { %v156_v20 = vpop.f32.mrf.mxu0  ;;  %v164_v21 = vpop.f32.mrf.mxu1 }
  0xeb   :  { %v178_v22 = vsel %vm168_vm1, %v164_v21, 0.0  ;;  %v172_v23 = vsel %vm168_vm1, %v156_v20, 0.0 }
  0xec   :  { %179 = vadd.xlane.f32.xlu1 %v178_v22  ;;  %v166_v24 = vpop.f32.mrf.mxu1  ;;  %173 = vadd.xlane.f32.xlu0 %v172_v23  ;;  %v158_v25 = vpop.f32.mrf.mxu0 }
 0x171   :  { %v177_v26 = vpop.xlane.xlu1 %176  ;;  %v171_v27 = vpop.xlane.xlu0 %170 }
 0x172   :  { %v184_v28 = vmul.f32 0.03125, %v177_v26  ;;  %v182_v29 = vmul.f32 0.03125, %v171_v27 }
 0x174   :  { %v443_v30 = vsub.f32 %v161_v15, %v184_v28  ;;  %v445_v31 = vsub.f32 %v153_v14, %v182_v29 }
 0x175   :  { %v180_v32 = vpop.xlane.xlu1 %179  ;;  %v174_v33 = vpop.xlane.xlu0 %173 }
 0x176   :  { %v185_v34 = vmul.f32 0.03125, %v180_v32  ;;  %v183_v35 = vmul.f32 0.03125, %v174_v33  ;;  %v190_v36 = vmul.f32 %v445_v31, %v445_v31  ;;  %v192_v40 = vmul.f32 %v443_v30, %v443_v30 }
 0x178   :  { %v449_v37 = vsub.f32 %v164_v21, %v185_v34  ;;  %v451_v38 = vsub.f32 %v156_v20, %v183_v35  ;;  %v194_v39 = vsel %vm168_vm1, %v190_v36, 0.0  ;;  %v200_v42 = vsel %vm168_vm1, %v192_v40, 0.0 }
 0x179   :  { %195 = vadd.xlane.f32.xlu0 %v194_v39 }
 0x17a   :  { %v191_v41 = vmul.f32 %v451_v38, %v451_v38  ;;  %v193_v44 = vmul.f32 %v449_v37, %v449_v37 }
 0x17c   :  { %v197_v43 = vsel %vm168_vm1, %v191_v41, 0.0  ;;  %v203_v45 = vsel %vm168_vm1, %v193_v44, 0.0 }
 0x17d   :  { %201 = vadd.xlane.f32.xlu0 %v200_v42  ;;  %198 = vadd.xlane.f32.xlu1 %v197_v43 }
 0x181   :  { %204 = vadd.xlane.f32.xlu1 %v203_v45 }
 0x192   :  { %256 = vperm.xlu1 %350, %v226_v46  }
 0x196   :  { %261 = vperm.xlu1 %350, %v227_v47  }
 0x19a   :  { %266 = vperm.xlu1 %350, %v228_v48  }
 0x202   :  { %v196_v49 = vpop.xlane.xlu0 %195 }
 0x203   :  { %v206_v50 = vmul.f32 0.03125, %v196_v49 }
 0x205   :  { %v214_v51 = vadd.f32 1e-05, %v206_v50 }
 0x206   :  { %v199_v52 = vpop.xlane.xlu1 %198  ;;  %v202_v53 = vpop.xlane.xlu0 %201 }
 0x207   :  { %366 = vrsqrt.f32 %v214_v51  ;;  %v207_v54 = vmul.f32 0.03125, %v199_v52  ;;  %v208_v55 = vmul.f32 0.03125, %v202_v53 }
 0x209   :  { %v216_v56 = vadd.f32 1e-05, %v208_v55  ;;  %v215_v57 = vadd.f32 1e-05, %v207_v54 }
 0x20a   :  { %v205_v58 = vpop.xlane.xlu1 %204 }
 0x20b   :  { %v209_v59 = vmul.f32 0.03125, %v205_v58  ;;  %368 = vrsqrt.f32 %v216_v56 }
 0x20c   :  { %370 = vrsqrt.f32 %v215_v57 }
 0x20d   :  { %v217_v60 = vadd.f32 1e-05, %v209_v59 }
 0x20e   :  { %v257_v10 = vpop.permute.xlu1 %256 }
 0x20f   :  { %372 = vrsqrt.f32 %v217_v60 }
 0x212   :  { %v262_v11 = vpop.permute.xlu1 %261 }
 0x214   :  { %v367_v62 = vpop.eup %366 }
 0x215   :  { %v222_v63 = vmul.f32 %v367_v62, %v210_v61 }
 0x216   :  { %v267_v13 = vpop.permute.xlu1 %266 }
 0x217   :  { %232 = vperm.xlu0 %349, %v222_v63  }
 0x218   :  { %v369_v1 = vpop.eup %368 }
 0x219   :  { %v224_v2 = vmul.f32 %v369_v1, %v212_v0  ;;  %v371_v3 = vpop.eup %370 }
 0x21a   :  { %v223_v5 = vmul.f32 %v371_v3, %v211_v4 }
 0x21b   :  { %242 = vperm.xlu1 %350, %v224_v2  }
 0x21c   :  { %v373_v6 = vpop.eup %372 }
 0x21d   :  { %v225_v8 = vmul.f32 %v373_v6, %v213_v7 }
 0x21f   :  { %237 = vperm.xlu1 %350, %v223_v5  }
 0x223   :  { %247 = vperm.xlu1 %350, %v225_v8  }
 0x227   :  { %271 = vperm.xlu1 %350, %v229_v9  }
 0x292   :  { %v233_v12 = vpop.permute.xlu0 %232 }
 0x293   :  { %v250_v14 = vmul.f32 %v233_v12, %v445_v31 }
 0x295   :  { %v274_v15 = vadd.f32 %v257_v10, %v250_v14 }
 0x296   :  { %v243_v17 = vpop.permute.xlu1 %242 }
 0x297   :  { %v278_v16 = vmax.f32 %v274_v15, 0.0  ;;  %v252_v18 = vmul.f32 %v243_v17, %v443_v30 }
 0x299   :  { %v326_v19 = vpack.c.bf16 %v278_v16, %v278_v16  ;;  %v276_v20 = vadd.f32 %v267_v13, %v252_v18 }
 0x29a   :  { %v238_v21 = vpop.permute.xlu1 %237 }
 0x29b   :  { %299 = vst.msk [vmem:[%s511_s4] sm:$0xf] %vm298_vm2, %v326_v19  ;;  %v280_v22 = vmax.f32 %v276_v20, 0.0  ;;  %v251_v23 = vmul.f32 %v238_v21, %v451_v38 }
 0x29d   :  { %v328_v24 = vpack.c.bf16 %v280_v22, %v280_v22  ;;  %v275_v25 = vadd.f32 %v262_v11, %v251_v23 }
 0x29e   :  { %v248_v26 = vpop.permute.xlu1 %247 }
 0x29f   :  { %301 = vst.msk [vmem:[%s511_s4 + $0x8] sm:$0xf] %vm298_vm2, %v328_v24  ;;  %v279_v27 = vmax.f32 %v275_v25, 0.0  ;;  %v253_v29 = vmul.f32 %v248_v26, %v449_v37 }
 0x2a1   :  { %v327_v28 = vpack.c.bf16 %v279_v27, %v279_v27 }
 0x2a2   :  { %v272_v30 = vpop.permute.xlu1 %271 }
 0x2a3   :  { %300 = vst.msk [vmem:[%s511_s4 + $0x4] sm:$0xf] %vm298_vm2, %v327_v28  ;;  %v277_v31 = vadd.f32 %v272_v30, %v253_v29 }
 0x2a5   :  { %v281_v32 = vmax.f32 %v277_v31, 0.0 }
 0x2a7   :  { %v329_v33 = vpack.c.bf16 %v281_v32, %v281_v32 }
 0x2a9   :  { %302 = vst.msk [vmem:[%s511_s4 + $0xc] sm:$0xf] %vm298_vm2, %v329_v33 }

// kernel: aev4_forward.9
= control target key start
LH: loop header
LB: loop body
LE: loop exit
PB: predicated region body
PF: predicated region fallthrough
CT: control target
= control target key end

     0   :  { %v175_v0 = vmov 0   ;;  %vm104_vm0 = vcmask 130048   ;;  %s232_s1 = inlined_call_operand.vmem [shape: bf16[144,128], index: 1, kind: input, shape index: {}]   ;;  %s233_s0 = inlined_call_operand.vmem [shape: bf16[4,144], index: 0, kind: input, shape index: {}]   ;;  %s234_s2 = inlined_call_operand.vmem [shape: f32[4,1], index: 2, kind: input, shape index: {}]   ;;  %s235_s3 = inlined_call_operand.vmem [shape: f32[4,128], index: 3, kind: output, shape index: {}]  }
   0x1   :  { %108 = vmatprep.subr.bf16.mxu0 %v175_v0  ;;  %v166_v1 = vld [vmem:[%s232_s1 + $0x38] sm:$0xff]   ;;  %165 = vset.pattern.permute.xlu0 %v175_v0  ;;  %v167_v2 = vld [vmem:[%s232_s1 + $0x30] sm:$0xff]   ;;  %v168_v3 = vld [vmem:[%s232_s1 + $0x28] sm:$0xff]  }
   0x2   :  { %109 = vmatpush1.bf16.msra.mxu0 %v166_v1  ;;  %v153_v4 = vld.sshfl [vmem:[%s233_s0] sm:$0x33 pattern:$0x76325410]  ;;  %v170_v8 = vld [vmem:[%s232_s1 + $0x18] sm:$0xff]   ;;  %v171_v9 = vld [vmem:[%s232_s1 + $0x10] sm:$0xff]  }
   0x3   :  { %110 = vmatprep.subr.bf16.mxu0 %v175_v0  ;;  %v34_v5 = vld [vmem:[%s234_s2] sm:$0xf]  ;;  %v48_v7 = vcombine.high %v153_v4, %v153_v4  ;;  %v172_v10 = vld [vmem:[%s232_s1 + $0x8] sm:$0xff]  }
   0x4   :  { %v169_v6 = vld [vmem:[%s232_s1 + $0x20] sm:$0xff]   ;;  %37 = vperm.xlu0 %165, %v34_v5  }
   0x5   :  { %163 = vmatprep.mubr.msk.bf16.mxu0 %vm104_vm0, %v48_v7  ;;  %v173_v11 = vld [vmem:[%s232_s1] sm:$0xff]  }
   0x6   :  { %111 = vmatpush1.bf16.msra.mxu0 %v167_v2  ;;  %v174_v12 = vld [vmem:[%s232_s1 + $0x40] sm:$0xff]  }
   0x7   :  { %112 = vmatprep.subr.bf16.mxu0 %v175_v0 }
   0xa   :  { %113 = vmatpush1.bf16.msra.mxu0 %v168_v3 }
   0xb   :  { %114 = vmatprep.subr.bf16.mxu0 %v175_v0 }
   0xe   :  { %115 = vmatpush1.bf16.msra.mxu0 %v169_v6 }
   0xf   :  { %116 = vmatprep.subr.bf16.mxu0 %v175_v0 }
  0x12   :  { %117 = vmatpush1.bf16.msra.mxu0 %v170_v8 }
  0x13   :  { %118 = vmatprep.subr.bf16.mxu0 %v175_v0 }
  0x16   :  { %119 = vmatpush1.bf16.msra.mxu0 %v171_v9 }
  0x17   :  { %120 = vmatprep.subr.bf16.mxu0 %v175_v0 }
  0x1a   :  { %121 = vmatpush1.bf16.msra.mxu0 %v172_v10 }
  0x1b   :  { %122 = vmatprep.subr.bf16.mxu0 %v175_v0 }
  0x1e   :  { %123 = vmatpush1.bf16.msra.mxu0 %v173_v11 }
  0x1f   :  { %138 = vmatprep.subr.bf16.mxu0 %v175_v0 }
  0x22   :  { %139 = vmatpush2.bf16.msra.mxu0 %v174_v12 }
  0x25   :  { %141 = vmatmul.mubr.bf16.vlgmr.msra.gmra.mxu0 %v153_v4 }
  0x7f   :  { %v38_v13 = vpop.permute.xlu0 %37 }
  0xe5   :  { %v142_v14 = vpop.f32.mrf.mxu0 }
  0xe6   :  { %v143_v15 = vadd.f32 %v142_v14, %v38_v13 }
  0xe7   :  { %v144_v16 = vpop.f32.mrf.mxu0 }
  0xe8   :  { %148 = vst [vmem:[%s235_s3] sm:$0xf] %v143_v15 }
  0xe9   :  { %v145_v17 = vpop.f32.mrf.mxu0 }
  0xeb   :  { %v146_v18 = vpop.f32.mrf.mxu0 }

// kernel: aev4_forward.8
= control target key start
LH: loop header
LB: loop body
LE: loop exit
PB: predicated region body
PF: predicated region fallthrough
CT: control target
= control target key end

     0   :  { %vm241_vm0 = vcmask 261120   ;;  %vm585_vm1 = vcmask 257024   ;;  %s1012_s1 = inlined_call_operand.vmem [shape: bf16[288,32], index: 1, kind: input, shape index: {}]   ;;  %s1013_s0 = inlined_call_operand.vmem [shape: bf16[64,288], index: 0, kind: input, shape index: {}]   ;;  %s1014_s2 = inlined_call_operand.vmem [shape: f32[16,1], index: 2, kind: input, shape index: {}]   ;;  %s1015_s3 = inlined_call_operand.vmem [shape: f32[16,1], index: 3, kind: input, shape index: {}]   ;;  %s1016_s4 = inlined_call_operand.vmem [shape: bf16[64,32], index: 4, kind: input, shape index: {}]   ;;  %s1017_s5 = inlined_call_operand.vmem [shape: bf16[64,32], index: 5, kind: output, shape index: {}]  }
   0x1   :  { %v744_v0 = vld [vmem:[%s1012_s1 + $0x78] sm:$0xff]   ;;  %v746_v2 = vld [vmem:[%s1012_s1 + $0x70] sm:$0xff]   ;;  %v748_v4 = vld [vmem:[%s1012_s1 + $0x68] sm:$0xff]  }
   0x2   :  { %v745_v1 = vld [vmem:[%s1012_s1 + $0x38] sm:$0xff]   ;;  %667 = vmatprep.subr.bf16.mxu0 %v744_v0  ;;  %725 = vmatprep.subr.bf16.mxu1 %v744_v0  ;;  %v747_v3 = vld [vmem:[%s1012_s1 + $0x30] sm:$0xff]   ;;  %v749_v5 = vld [vmem:[%s1012_s1 + $0x28] sm:$0xff]  }
   0x3   :  { %668 = vmatpush3.bf16.msra.mxu0 %v745_v1  ;;  %733 = vmatpush3.bf16.msra.mxu1 %v745_v1  ;;  %v750_v6 = vld [vmem:[%s1012_s1 + $0x60] sm:$0xff]   ;;  %v752_v8 = vld [vmem:[%s1012_s1 + $0x58] sm:$0xff]   ;;  %v754_v10 = vld [vmem:[%s1012_s1 + $0x50] sm:$0xff]  }
   0x4   :  { %669 = vmatprep.subr.bf16.mxu0 %v746_v2  ;;  %726 = vmatprep.subr.bf16.mxu1 %v746_v2  ;;  %v751_v7 = vld [vmem:[%s1012_s1 + $0x20] sm:$0xff]   ;;  %v753_v9 = vld [vmem:[%s1012_s1 + $0x18] sm:$0xff]   ;;  %v755_v13 = vld [vmem:[%s1012_s1 + $0x10] sm:$0xff]  }
   0x5   :  { %v762_v11 = vld [vmem:[%s1013_s0 + $0x4] ss:$12 sps:$4 sm:$0xff]   ;;  %v765_v12 = vld [vmem:[%s1013_s0 + $0x4c] ss:$12 sps:$4 sm:$0xff]   ;;  %v763_v20 = vld [vmem:[%s1013_s0 + $0x48] ss:$12 sps:$4 sm:$0xff]  }
   0x6   :  { %v756_v14 = vld [vmem:[%s1012_s1 + $0x48] sm:$0xff]   ;;  %286 = vmatprep.mubr.bf16.mxu0 %v762_v11  ;;  %310 = vmatprep.mubr.bf16.mxu1 %v765_v12  ;;  %v758_v16 = vld [vmem:[%s1012_s1 + $0x40] sm:$0xff]   ;;  %v776_v28 = vld [vmem:[%s1013_s0 + $0x30] ss:$12 sps:$4 sm:$0xff]  }
   0x7   :  { %670 = vmatpush3.bf16.msra.mxu0 %v747_v3  ;;  %734 = vmatpush3.bf16.msra.mxu1 %v747_v3  ;;  %v757_v15 = vld [vmem:[%s1012_s1 + $0x8] sm:$0xff]   ;;  %v759_v17 = vld [vmem:[%s1012_s1] sm:$0xff]   ;;  %v777_v29 = vld [vmem:[%s1013_s0 + $0x50] ss:$12 sps:$4 sm:$0xff]  }
   0x8   :  { %671 = vmatprep.subr.bf16.mxu0 %v748_v4  ;;  %727 = vmatprep.subr.bf16.mxu1 %v748_v4  ;;  %v766_v18 = vld [vmem:[%s1012_s1 + $0x88] sm:$0xff]   ;;  %v767_v22 = vld [vmem:[%s1012_s1 + $0x80] sm:$0xff]  }
   0x9   :  { %v760_v19 = vld [vmem:[%s1013_s0] ss:$12 sps:$4 sm:$0xff]   ;;  %v768_v21 = vld [vmem:[%s1013_s0 + $0x1c] ss:$12 sps:$4 sm:$0xff]   ;;  %v771_v24 = vld [vmem:[%s1013_s0 + $0x18] ss:$12 sps:$4 sm:$0xff]  }
   0xa   :  { %v770_v23 = vld [vmem:[%s1013_s0 + $0x8] ss:$12 sps:$4 sm:$0xff]   ;;  %v772_v25 = vld [vmem:[%s1013_s0 + $0x20] ss:$12 sps:$4 sm:$0xff]   ;;  %v775_v27 = vld [vmem:[%s1013_s0 + $0x38] ss:$12 sps:$4 sm:$0xff]  }
   0xb   :  { %672 = vmatpush3.bf16.msra.mxu0 %v749_v5  ;;  %735 = vmatpush3.bf16.msra.mxu1 %v749_v5  ;;  %v773_v26 = vld [vmem:[%s1013_s0 + $0x34] ss:$12 sps:$4 sm:$0xff]  }
   0xc   :  { %673 = vmatprep.subr.bf16.mxu0 %v750_v6  ;;  %728 = vmatprep.subr.bf16.mxu1 %v750_v6 }
   0xf   :  { %674 = vmatpush3.bf16.msra.mxu0 %v751_v7  ;;  %736 = vmatpush3.bf16.msra.mxu1 %v751_v7 }
  0x10   :  { %675 = vmatprep.subr.bf16.mxu0 %v752_v8  ;;  %729 = vmatprep.subr.bf16.mxu1 %v752_v8 }
  0x13   :  { %676 = vmatpush3.bf16.msra.mxu0 %v753_v9  ;;  %737 = vmatpush3.bf16.msra.mxu1 %v753_v9 }
  0x14   :  { %677 = vmatprep.subr.bf16.mxu0 %v754_v10  ;;  %730 = vmatprep.subr.bf16.mxu1 %v754_v10 }
  0x17   :  { %678 = vmatpush3.bf16.msra.mxu0 %v755_v13  ;;  %738 = vmatpush3.bf16.msra.mxu1 %v755_v13 }
  0x18   :  { %679 = vmatprep.subr.bf16.mxu0 %v756_v14  ;;  %731 = vmatprep.subr.bf16.mxu1 %v756_v14  ;;  %v782_v14 = vmov 0  }
  0x19   :  { %742 = vset.pattern.permute.xlu0 %v782_v14  ;;  %743 = vset.pattern.permute.xlu1 %v782_v14  ;;  %v484_v14 = vld [vmem:[%s1015_s3 + $0x8] sm:$0xff] }
  0x1b   :  { %680 = vmatpush3.bf16.msra.mxu0 %v757_v15  ;;  %739 = vmatpush3.bf16.msra.mxu1 %v757_v15 }
  0x1c   :  { %681 = vmatprep.subr.bf16.mxu0 %v758_v16  ;;  %732 = vmatprep.subr.bf16.mxu1 %v758_v16 }
  0x1f   :  { %682 = vmatpush3.bf16.msra.mxu0 %v759_v17  ;;  %740 = vmatpush3.bf16.msra.mxu1 %v759_v17 }
  0x20   :  { %713 = vmatprep.subr.bf16.mxu1 %v766_v18 }
  0x22   :  { %287 = vmatmul.mubr.bf16.vlgmr.msra.gmra.mxu0 %v760_v19  ;;  %311 = vmatmul.mubr.bf16.vlgmr.msra.gmra.mxu1 %v763_v20 }
  0x23   :  { %714 = vmatpush3.bf16.msra.mxu1 %v766_v18  ;;  %294 = vmatprep.mubr.bf16.mxu0 %v768_v21 }
  0x24   :  { %715 = vmatprep.subr.bf16.mxu1 %v767_v22  ;;  %717 = vmatprep.mubr.msk.bf16.mxu1 %vm241_vm0, %v770_v23 }
  0x27   :  { %716 = vmatpush3.bf16.msra.mxu1 %v767_v22 }
  0x2a   :  { %295 = vmatmul.mubr.bf16.gmra.mxu0 %v771_v24  ;;  %718 = vmatmul.mubr.msk.bf16.vlgmr.msra.gmra.mxu1 %vm241_vm0, %v772_v25 }
  0x2b   :  { %302 = vmatprep.mubr.bf16.mxu0 %v773_v26  ;;  %721 = vmatprep.mubr.msk.bf16.mxu1 %vm241_vm0, %v775_v27 }
  0x32   :  { %303 = vmatmul.mubr.bf16.gmra.mxu0 %v776_v28  ;;  %722 = vmatmul.mubr.msk.bf16.gmra.mxu1 %vm241_vm0, %v777_v29 }
  0xe2   :  { %v683_v30 = vpop.f32.mrf.mxu0  ;;  %v701_v31 = vpop.f32.mrf.mxu1 }
  0xe4   :  { %v684_v32 = vpop.f32.mrf.mxu0  ;;  %v702_v33 = vpop.f32.mrf.mxu1 }
  0xe5   :  { %v685_v40 = vadd.f32 %v684_v32, %v683_v30  ;;  %v703_v1 = vadd.f32 %v702_v33, %v701_v31 }
  0xe6   :  { %v686_v34 = vpop.f32.mrf.mxu0  ;;  %v704_v35 = vpop.f32.mrf.mxu1 }
  0xe8   :  { %v687_v36 = vpop.f32.mrf.mxu0  ;;  %v705_v37 = vpop.f32.mrf.mxu1 }
  0xe9   :  { %v688_v47 = vadd.f32 %v687_v36, %v686_v34  ;;  %v706_v8 = vadd.f32 %v705_v37, %v704_v35 }
  0xea   :  { %v689_v38 = vpop.f32.mrf.mxu0  ;;  %v719_v39 = vpop.f32.mrf.mxu1 }
  0xec   :  { %v690_v41 = vpop.f32.mrf.mxu0  ;;  %v353_v42 = vpop.f32.mrf.mxu1 }
  0xed   :  { %v691_v43 = vadd.f32 %v690_v41, %v689_v38  ;;  %v907_v44 = vadd.f32 %v685_v40, %v353_v42 }
  0xee   :  { %v692_v45 = vpop.f32.mrf.mxu0  ;;  %v720_v46 = vpop.f32.mrf.mxu1 }
  0xef   :  { %v384_v48 = vsel %vm241_vm0, %v907_v44, 0.0  ;;  %v362_v49 = vadd.f32 %v719_v39, %v691_v43 }
  0xf0   :  { %v693_v50 = vpop.f32.mrf.mxu0  ;;  %v356_v51 = vpop.f32.mrf.mxu1  ;;  %385 = vadd.xlane.f32.xlu0 %v384_v48 }
  0xf1   :  { %v694_v52 = vadd.f32 %v693_v50, %v692_v45  ;;  %v357_v53 = vadd.f32 %v688_v47, %v356_v51  ;;  %v390_v54 = vsel %vm241_vm0, %v362_v49, 0.0 }
  0xf2   :  { %v695_v55 = vpop.f32.mrf.mxu0  ;;  %v723_v56 = vpop.f32.mrf.mxu1  ;;  %391 = vadd.xlane.f32.xlu1 %v390_v54 }
  0xf3   :  { %v387_v57 = vsel %vm241_vm0, %v357_v53, 0.0  ;;  %v913_v58 = vadd.f32 %v720_v46, %v694_v52  ;;  %v378_v4 = vadd.f32 %v723_v56, %v703_v1 }
  0xf4   :  { %v696_v59 = vpop.f32.mrf.mxu0  ;;  %v369_v60 = vpop.f32.mrf.mxu1  ;;  %388 = vadd.xlane.f32.xlu0 %v387_v57 }
  0xf5   :  { %v697_v61 = vadd.f32 %v696_v59, %v695_v55  ;;  %v393_v62 = vsel %vm241_vm0, %v913_v58, 0.0  ;;  %v402_v12 = vsel %vm241_vm0, %v378_v4, 0.0 }
  0xf6   :  { %v698_v63 = vpop.f32.mrf.mxu0  ;;  %v724_v0 = vpop.f32.mrf.mxu1  ;;  %394 = vadd.xlane.f32.xlu1 %v393_v62 }
  0xf7   :  { %v370_v2 = vadd.f32 %v697_v61, %v369_v60  ;;  %v381_v10 = vadd.f32 %v724_v0, %v706_v8 }
  0xf8   :  { %v699_v3 = vpop.f32.mrf.mxu0  ;;  %v372_v7 = vpop.f32.mrf.mxu1 }
  0xf9   :  { %v700_v5 = vadd.f32 %v699_v3, %v698_v63  ;;  %v396_v6 = vsel %vm241_vm0, %v370_v2, 0.0  ;;  %v405_v13 = vsel %vm241_vm0, %v381_v10, 0.0 }
  0xfa   :  { %397 = vadd.xlane.f32.xlu0 %v396_v6 }
  0xfb   :  { %v373_v9 = vadd.f32 %v700_v5, %v372_v7 }
  0xfd   :  { %v399_v11 = vsel %vm241_vm0, %v373_v9, 0.0 }
  0xfe   :  { %400 = vadd.xlane.f32.xlu1 %v399_v11  ;;  %403 = vadd.xlane.f32.xlu0 %v402_v12  ;;  %v475_v11 = vld [vmem:[%s1014_s2] sm:$0xff] }
 0x102   :  { %406 = vadd.xlane.f32.xlu1 %v405_v13 }
 0x179   :  { %v386_v15 = vpop.xlane.xlu0 %385 }
 0x17b   :  { %v392_v16 = vpop.xlane.xlu1 %391 }
 0x17c   :  { %v408_v20 = vadd.f32 %v392_v16, %v386_v15  ;;  %v476_v15 = vld [vmem:[%s1014_s2 + $0x8] sm:$0xff] }
 0x17d   :  { %v389_v17 = vpop.xlane.xlu0 %388 }
 0x17f   :  { %v395_v18 = vpop.xlane.xlu1 %394 }
 0x180   :  { %v409_v24 = vadd.f32 %v395_v18, %v389_v17  ;;  %v483_v18 = vld [vmem:[%s1015_s3] sm:$0xff] }
 0x183   :  { %v398_v19 = vpop.xlane.xlu0 %397 }
 0x184   :  { %v410_v21 = vadd.f32 %v408_v20, %v398_v19  ;;  %v649_v20 = vld [vmem:[%s1016_s4] sm:$0xff]  }
 0x187   :  { %v401_v22 = vpop.xlane.xlu1 %400  ;;  %v404_v23 = vpop.xlane.xlu0 %403 }
 0x188   :  { %v412_v25 = vadd.f32 %v410_v21, %v404_v23  ;;  %v411_v26 = vadd.f32 %v409_v24, %v401_v22  ;;  %v664_v21 = vld [vmem:[%s1016_s4 + $0x8] sm:$0xff]   ;;  %v665_v22 = vld [vmem:[%s1016_s4 + $0x10] sm:$0xff]   ;;  %v666_v23 = vld [vmem:[%s1016_s4 + $0x18] sm:$0xff]  }
 0x18a   :  { %v415_v27 = vmul.f32 0.0078125, %v412_v25  ;;  %v650_v25 = vunpack.c.l.bf16 %v649_v20 }
 0x18b   :  { %v407_v28 = vpop.xlane.xlu1 %406 }
 0x18c   :  { %v413_v29 = vadd.f32 %v411_v26, %v407_v28  ;;  %419 = vperm.xlu0 %742, %v415_v27   ;;  %v651_v26 = vunpack.c.h.bf16 %v649_v20  ;;  %v654_v27 = vunpack.c.l.bf16 %v664_v21  ;;  %v655_v28 = vunpack.c.h.bf16 %v664_v21 }
 0x18e   :  { %v416_v30 = vmul.f32 0.0078125, %v413_v29 }
 0x190   :  { %424 = vperm.xlu1 %743, %v416_v30  }
 0x207   :  { %v420_v31 = vpop.permute.xlu0 %419 }
 0x208   :  { %v922_v32 = vsub.f32 %v907_v44, %v420_v31  ;;  %v924_v33 = vsub.f32 %v362_v49, %v420_v31  ;;  %v933_v39 = vsub.f32 %v370_v2, %v420_v31  ;;  %v941_v44 = vsub.f32 %v378_v4, %v420_v31 }
 0x20a   :  { %v435_v34 = vmul.f32 %v922_v32, %v922_v32  ;;  %v437_v38 = vmul.f32 %v924_v33, %v924_v33  ;;  %v439_v43 = vmul.f32 %v933_v39, %v933_v39  ;;  %v441_v46 = vmul.f32 %v941_v44, %v941_v44 }
 0x20b   :  { %v425_v35 = vpop.permute.xlu1 %424 }
 0x20c   :  { %v443_v36 = vsel %vm241_vm0, %v435_v34, 0.0  ;;  %v929_v37 = vsub.f32 %v357_v53, %v425_v35  ;;  %v449_v42 = vsel %vm241_vm0, %v437_v38, 0.0  ;;  %v455_v45 = vsel %vm241_vm0, %v439_v43, 0.0 }
 0x20d   :  { %444 = vadd.xlane.f32.xlu1 %v443_v36  ;;  %v430_v47 = vsub.f32 %v913_v58, %v425_v35  ;;  %v461_v48 = vsel %vm241_vm0, %v441_v46, 0.0  ;;  %v432_v50 = vsub.f32 %v373_v9, %v425_v35  ;;  %v434_v53 = vsub.f32 %v381_v10, %v425_v35 }
 0x20e   :  { %v436_v40 = vmul.f32 %v929_v37, %v929_v37  ;;  %v658_v36 = vunpack.c.l.bf16 %v665_v22  ;;  %v659_v38 = vunpack.c.h.bf16 %v665_v22 }
 0x20f   :  { %v438_v49 = vmul.f32 %v430_v47, %v430_v47  ;;  %v440_v52 = vmul.f32 %v432_v50, %v432_v50  ;;  %v442_v55 = vmul.f32 %v434_v53, %v434_v53 }
 0x210   :  { %v446_v41 = vsel %vm241_vm0, %v436_v40, 0.0  ;;  %v662_v40 = vunpack.c.l.bf16 %v666_v23 }
 0x211   :  { %447 = vadd.xlane.f32.xlu0 %v446_v41  ;;  %450 = vadd.xlane.f32.xlu1 %v449_v42  ;;  %v452_v51 = vsel %vm241_vm0, %v438_v49, 0.0  ;;  %v458_v54 = vsel %vm241_vm0, %v440_v52, 0.0  ;;  %v464_v56 = vsel %vm241_vm0, %v442_v55, 0.0  ;;  %v663_v41 = vunpack.c.h.bf16 %v666_v23 }
 0x215   :  { %456 = vadd.xlane.f32.xlu1 %v455_v45 }
 0x219   :  { %462 = vadd.xlane.f32.xlu1 %v461_v48 }
 0x21d   :  { %453 = vadd.xlane.f32.xlu1 %v452_v51 }
 0x221   :  { %459 = vadd.xlane.f32.xlu1 %v458_v54 }
 0x225   :  { %465 = vadd.xlane.f32.xlu1 %v464_v56 }
 0x296   :  { %v445_v57 = vpop.xlane.xlu1 %444 }
 0x29a   :  { %v451_v58 = vpop.xlane.xlu1 %450  ;;  %v448_v3 = vpop.xlane.xlu0 %447 }
 0x29b   :  { %v467_v60 = vadd.f32 %v451_v58, %v445_v57 }
 0x29e   :  { %v457_v59 = vpop.xlane.xlu1 %456 }
 0x29f   :  { %v469_v61 = vadd.f32 %v467_v60, %v457_v59 }
 0x2a2   :  { %v463_v62 = vpop.xlane.xlu1 %462 }
 0x2a3   :  { %v471_v63 = vadd.f32 %v469_v61, %v463_v62 }
 0x2a5   :  { %v473_v0 = vmul.f32 0.0078125, %v471_v63 }
 0x2a6   :  { %v454_v1 = vpop.xlane.xlu1 %453 }
 0x2a7   :  { %v477_v2 = vadd.f32 1e-05, %v473_v0  ;;  %v468_v5 = vadd.f32 %v454_v1, %v448_v3 }
 0x2a9   :  { %778 = vrsqrt.f32 %v477_v2 }
 0x2aa   :  { %v460_v4 = vpop.xlane.xlu1 %459 }
 0x2ab   :  { %v470_v6 = vadd.f32 %v468_v5, %v460_v4 }
 0x2ae   :  { %v466_v7 = vpop.xlane.xlu1 %465 }
 0x2af   :  { %v472_v8 = vadd.f32 %v470_v6, %v466_v7 }
 0x2b1   :  { %v474_v9 = vmul.f32 0.0078125, %v472_v8 }
 0x2b3   :  { %v478_v10 = vadd.f32 1e-05, %v474_v9 }
 0x2b5   :  { %780 = vrsqrt.f32 %v478_v10 }
 0x2b6   :  { %v779_v12 = vpop.eup %778 }
 0x2b7   :  { %v481_v13 = vmul.f32 %v779_v12, %v475_v11 }
 0x2b9   :  { %487 = vperm.xlu0 %742, %v481_v13  }
 0x2bd   :  { %510 = vperm.xlu0 %742, %v484_v14  }
 0x2c2   :  { %v781_v16 = vpop.eup %780 }
 0x2c3   :  { %v482_v17 = vmul.f32 %v781_v16, %v476_v15 }
 0x2c5   :  { %492 = vperm.xlu1 %743, %v482_v17  }
 0x2c9   :  { %505 = vperm.xlu1 %743, %v483_v18  }
 0x334   :  { %v488_v19 = vpop.permute.xlu0 %487 }
 0x335   :  { %v495_v49 = vmul.f32 %v488_v19, %v922_v32  ;;  %v497_v51 = vmul.f32 %v488_v19, %v924_v33  ;;  %v499_v52 = vmul.f32 %v488_v19, %v933_v39 }
 0x338   :  { %v511_v35 = vpop.permute.xlu0 %510 }
 0x340   :  { %v493_v24 = vpop.permute.xlu1 %492 }
 0x341   :  { %v496_v29 = vmul.f32 %v493_v24, %v929_v37  ;;  %v498_v30 = vmul.f32 %v493_v24, %v430_v47  ;;  %v500_v31 = vmul.f32 %v493_v24, %v432_v50  ;;  %v502_v34 = vmul.f32 %v493_v24, %v434_v53 }
 0x342   :  { %v501_v37 = vmul.f32 %v488_v19, %v941_v44 }
 0x343   :  { %v514_v42 = vadd.f32 %v511_v35, %v496_v29  ;;  %v516_v43 = vadd.f32 %v511_v35, %v498_v30  ;;  %v518_v45 = vadd.f32 %v511_v35, %v500_v31  ;;  %v520_v46 = vadd.f32 %v511_v35, %v502_v34 }
 0x344   :  { %v506_v48 = vpop.permute.xlu1 %505 }
 0x345   :  { %v522_v47 = vmax.f32 %v514_v42, 0.0  ;;  %v524_v50 = vmax.f32 %v516_v43, 0.0  ;;  %v526_v53 = vmax.f32 %v518_v45, 0.0  ;;  %v528_v54 = vmax.f32 %v520_v46, 0.0 }
 0x346   :  { %v513_v55 = vadd.f32 %v506_v48, %v495_v49  ;;  %v515_v56 = vadd.f32 %v506_v48, %v497_v51  ;;  %v517_v57 = vadd.f32 %v506_v48, %v499_v52  ;;  %v519_v58 = vadd.f32 %v506_v48, %v501_v37 }
 0x347   :  { %v546_v59 = vadd.f32 %v651_v26, %v522_v47  ;;  %v548_v60 = vadd.f32 %v655_v28, %v524_v50  ;;  %v550_v61 = vadd.f32 %v659_v38, %v526_v53  ;;  %v552_v62 = vadd.f32 %v663_v41, %v528_v54 }
 0x348   :  { %v521_v63 = vmax.f32 %v513_v55, 0.0  ;;  %v523_v32 = vmax.f32 %v515_v56, 0.0  ;;  %v525_v0 = vmax.f32 %v517_v57, 0.0  ;;  %v527_v33 = vmax.f32 %v519_v58, 0.0 }
 0x349   :  { %v641_v1 = vpack.c.bf16 %v546_v59, %v546_v59  ;;  %v643_v39 = vpack.c.bf16 %v548_v60, %v548_v60  ;;  %v645_v2 = vpack.c.bf16 %v550_v61, %v550_v61  ;;  %v647_v44 = vpack.c.bf16 %v552_v62, %v552_v62 }
 0x34a   :  { %v545_v3 = vadd.f32 %v650_v25, %v521_v63  ;;  %v547_v4 = vadd.f32 %v654_v27, %v523_v32  ;;  %v549_v5 = vadd.f32 %v658_v36, %v525_v0  ;;  %v551_v6 = vadd.f32 %v662_v40, %v527_v33 }
 0x34b   :  { %587 = vst.msk [vmem:[%s1017_s5 + $0x4] sm:$0xf] %vm585_vm1, %v641_v1  ;;  %589 = vst.msk [vmem:[%s1017_s5 + $0xc] sm:$0xf] %vm585_vm1, %v643_v39 }
 0x34c   :  { %591 = vst.msk [vmem:[%s1017_s5 + $0x14] sm:$0xf] %vm585_vm1, %v645_v2  ;;  %593 = vst.msk [vmem:[%s1017_s5 + $0x1c] sm:$0xf] %vm585_vm1, %v647_v44  ;;  %v640_v7 = vpack.c.bf16 %v545_v3, %v545_v3  ;;  %v642_v8 = vpack.c.bf16 %v547_v4, %v547_v4  ;;  %v644_v9 = vpack.c.bf16 %v549_v5, %v549_v5 }
 0x34d   :  { %v646_v10 = vpack.c.bf16 %v551_v6, %v551_v6 }
 0x34e   :  { %586 = vst.msk [vmem:[%s1017_s5] sm:$0xf] %vm585_vm1, %v640_v7  ;;  %588 = vst.msk [vmem:[%s1017_s5 + $0x8] sm:$0xf] %vm585_vm1, %v642_v8 }
 0x34f   :  { %590 = vst.msk [vmem:[%s1017_s5 + $0x10] sm:$0xf] %vm585_vm1, %v644_v9  ;;  %592 = vst.msk [vmem:[%s1017_s5 + $0x18] sm:$0xf] %vm585_vm1, %v646_v10 }

</bundles_post_ra>
